<compile_context>
chip_gen: v5e
topology: v5e:2x2
jax: 0.10.0
libtpu: 0.0.40
codegen_flags: <defaults>
</compile_context>

<pallas_src>
import functools

import jax
import jax.numpy as jnp
import numpy as np
from jax.experimental import pallas as pl
from jax.experimental.pallas import tpu as pltpu

LANE = 128


def _pick_tile(q, want):
    """Largest divisor of q that is <= want and a multiple of 8 (else q)."""
    want = max(8, min(want, q))
    for t in range(want, 7, -1):
        if q % t == 0 and t % 8 == 0:
            return t
    return q


# ----------------------------- Pallas kernels ------------------------------

def _conv_relu_pool_kernel(p_ref, w_ref, b_ref, o_ref):
    """Fused conv-as-matmul + bias + ReLU + 2x2/s2 max pool.

    p_ref: (4, TQ, K)   im2col rows; leading dim = the 4 pool phases, so the
                        four pool-mates of pooled row q sit at p_ref[:, q, :].
    w_ref: (K, 128)     weight, Cout zero-padded to 128 lanes.
    b_ref: (1, 128)     bias (zero-padded).
    o_ref: (TQ, 128)    pooled activations, rows ordered (n, ph, pw).
    """
    nph, tq, k = p_ref.shape
    # Single MXU dot over all 4 pool phases (4x better row fill than 4 dots),
    # then the pool max becomes cheap VPU work over the leading axis.
    p = p_ref[...].reshape(nph * tq, k)
    m = jnp.dot(p, w_ref[...], preferred_element_type=jnp.float32)
    m = jnp.max(m.reshape(nph, tq, m.shape[-1]), axis=0)
    # maxpool(relu(x+b)) == relu(max(x)+b): bias/ReLU applied after the max.
    o_ref[...] = jnp.maximum(m + b_ref[...], 0.0)


def _conv_fc_kernel(n_batch, p_ref, w_ref, b_ref, wfc_ref, bfc_ref, o_ref):
    """conv3 + ReLU + NCHW-order flatten + final FC in one kernel.

    p_ref:   (4*n_batch, 1600)  im2col rows ordered (oh, ow, n).
    w_ref:   (1600, 8)          conv3 weight (de-padded).
    b_ref:   (1, 8)             conv3 bias.
    wfc_ref: (4, 8, 128)        FC weight pre-permuted per output position.
    bfc_ref: (1, 128)           FC bias (lane-padded).
    o_ref:   (n_batch, 128)     logits live in lanes [0:2].
    """
    h = jnp.dot(p_ref[...], w_ref[...], preferred_element_type=jnp.float32)
    h = jnp.maximum(h + b_ref[...], 0.0)          # (4*n, 8)
    y = bfc_ref[...]
    for pos in range(4):                          # pos = oh*2 + ow
        blk = h[pos * n_batch:(pos + 1) * n_batch, :]
        y = y + jnp.dot(blk, wfc_ref[pos], preferred_element_type=jnp.float32)
    o_ref[...] = y


# --------------------------- layout glue (XLA, jitted) ----------------------

def _im2col(x_nhwc, ksize=5, stride=2, pad=2):
    """(N,H,W,C) -> (N, OH, OW, C*k*k); column order (c, kh, kw) matches
    the PyTorch OIHW weight reshape."""
    N, H, W, C = x_nhwc.shape
    OH = (H + 2 * pad - ksize) // stride + 1
    OW = (W + 2 * pad - ksize) // stride + 1
    xp = jnp.pad(x_nhwc, ((0, 0), (pad, pad), (pad, pad), (0, 0)))
    cols = [xp[:, kh:kh + stride * OH:stride, kw:kw + stride * OW:stride, :]
            for kh in range(ksize) for kw in range(ksize)]
    p = jnp.stack(cols, axis=0).reshape(ksize, ksize, N, OH, OW, C)
    p = p.transpose(2, 3, 4, 5, 0, 1).reshape(N, OH, OW, C * ksize * ksize)
    return p, OH, OW


# ------------------------------ fused layer calls ----------------------------

def _conv_relu_pool(x_nhwc, wmat, brow, cout, tile_q):
    """5x5/s2/p2 conv + ReLU + 2x2/s2 max pool as one gridded pallas_call.

    wmat: (K, 128) pre-transposed/padded weight.  brow: (1, 128) bias row.
    """
    N = x_nhwc.shape[0]
    K = wmat.shape[0]

    p, OH, OW = _im2col(x_nhwc)
    PH, PW = OH // 2, OW // 2
    Q = N * PH * PW
    # Group the 4 pool-mates of each pooled output as a leading "phase" dim.
    p = p.reshape(N, PH, 2, PW, 2, K).transpose(2, 4, 0, 1, 3, 5)
    p = p.reshape(4, Q, K)

    tq = _pick_tile(Q, tile_q)
    grid = (Q // tq,)

    out = pl.pallas_call(
        _conv_relu_pool_kernel,
        out_shape=jax.ShapeDtypeStruct((Q, LANE), jnp.float32),
        grid=grid,
        in_specs=[
            pl.BlockSpec((4, tq, K), lambda i: (0, i, 0)),
            pl.BlockSpec((K, LANE), lambda i: (0, 0)),   # resident weight
            pl.BlockSpec((1, LANE), lambda i: (0, 0)),   # resident bias
        ],
        out_specs=pl.BlockSpec((tq, LANE), lambda i: (i, 0)),
        compiler_params=pltpu.CompilerParams(
            dimension_semantics=("parallel",)),
    )(p, wmat, brow)
    # rows are (n, ph, pw); real channels are the first `cout` lanes
    return out[:, :cout].reshape(N, PH, PW, cout)


def _conv_relu_fc(x_nhwc, wmat3, b3row, wfc_re, bfc_row):
    """conv3 + ReLU + PyTorch-order flatten + fc as one pallas_call."""
    N = x_nhwc.shape[0]
    K = wmat3.shape[0]                   # 1600
    n_cls = 2

    p, OH, OW = _im2col(x_nhwc)          # OH = OW = 2
    # row order (oh, ow, n): the FC consumes contiguous per-position blocks.
    p = p.transpose(1, 2, 0, 3).reshape(OH * OW * N, K)

    vmem = pl.BlockSpec(memory_space=pltpu.MemorySpace.VMEM)
    out = pl.pallas_call(
        functools.partial(_conv_fc_kernel, N),
        out_shape=jax.ShapeDtypeStruct((N, LANE), jnp.float32),
        in_specs=[vmem] * 5,
        out_specs=vmem,
    )(p, wmat3, b3row, wfc_re, bfc_row)
    return out[:, :n_cls]


# ------------------------------ model wrapper -------------------------------

def init_params(key):
    """Deterministic synthetic init matching the PyTorch module's shapes/scales."""
    ks = jax.random.split(key, 4)

    def conv_w(k, cout, cin):
        std = 1.0 / np.sqrt(5 * 5 * cin)
        return (std * jax.random.normal(k, (cout, cin, 5, 5))).astype(jnp.float32)

    w1 = conv_w(ks[0], 16, 3);  b1 = jnp.zeros((16,), jnp.float32)
    w2 = conv_w(ks[1], 64, 16); b2 = jnp.zeros((64,), jnp.float32)
    w3 = conv_w(ks[2], 8, 64);  b3 = jnp.zeros((8,), jnp.float32)
    wfc = ((1.0 / np.sqrt(32)) *
           jax.random.normal(ks[3], (2, 32))).astype(jnp.float32)   # (out, in)
    bfc = jnp.zeros((2,), jnp.float32)
    return (w1, b1, w2, b2, w3, b3, wfc, bfc)


def prepare_params(params):
    """One-time layout prep: transpose/pad weights into kernel-ready arrays.

    Done ONCE outside the jitted forward so no per-call HBM traffic is spent
    rebuilding (mostly-zero) padded weights.
    """
    w1, b1, w2, b2, w3, b3, wfc, bfc = params

    def conv_mat(w_oihw, pad_out):
        cout = w_oihw.shape[0]
        k = w_oihw.shape[1] * 25
        m = w_oihw.reshape(cout, k).T                      # (K, Cout)
        if pad_out:
            m = jnp.pad(m, ((0, 0), (0, LANE - cout)))
        return m

    prep = {
        # conv1 / conv2: lane-padded Cout (lane-dense kernel outputs), K unpadded.
        "w1": conv_mat(w1, True), "b1": jnp.pad(b1, (0, LANE - 16)).reshape(1, LANE),
        "w2": conv_mat(w2, True), "b2": jnp.pad(b2, (0, LANE - 64)).reshape(1, LANE),
        # conv3: de-padded (1600, 8) weight + (1, 8) bias.
        "w3": conv_mat(w3, False), "b3": b3.reshape(1, 8),
    }
    # PyTorch flattens (N, C, H, W) -> feature c*4 + oh*2 + ow; fold that
    # permutation into the FC weight: wfc_re[pos, c, j] = wfc[j, c*4 + pos].
    n_cls = wfc.shape[0]                  # 2
    wfc_re = wfc.reshape(n_cls, 8, 2, 2).transpose(2, 3, 1, 0).reshape(4, 8, n_cls)
    prep["wfc"] = jnp.pad(wfc_re, ((0, 0), (0, 0), (0, LANE - n_cls)))
    prep["bfc"] = jnp.pad(bfc, (0, LANE - n_cls)).reshape(1, LANE)
    return prep


@jax.jit
def forward(x_nchw, prep):
    x = jnp.transpose(x_nchw, (0, 2, 3, 1))                    # NCHW -> NHWC
    h = _conv_relu_pool(x, prep["w1"], prep["b1"], cout=16, tile_q=128)  # (N,16,16,16)
    h = _conv_relu_pool(h, prep["w2"], prep["b2"], cout=64, tile_q=16)   # (N,4,4,64)
    return _conv_relu_fc(h, prep["w3"], prep["b3"], prep["wfc"], prep["bfc"])  # (N,2)


# ----------------------------- pure-JAX reference ----------------------------

@jax.jit
def reference_forward(x_nchw, params):
    w1, b1, w2, b2, w3, b3, wfc, bfc = params

    def conv(x, w, b):
        y = jax.lax.conv_general_dilated(
            x, w, window_strides=(2, 2), padding=((2, 2), (2, 2)),
            dimension_numbers=('NCHW', 'OIHW', 'NCHW'))
        return jax.nn.relu(y + b[None, :, None, None])

    def pool(x):
        return jax.lax.reduce_window(x, -jnp.inf, jax.lax.max,
                                     (1, 1, 2, 2), (1, 1, 2, 2), 'VALID')

    h = pool(conv(x_nchw, w1, b1))
    h = pool(conv(h, w2, b2))
    h = conv(h, w3, b3)
    h = h.reshape(h.shape[0], -1)
    return h @ wfc.T + bfc[None, :]


# ----------------------------------- main ------------------------------------

if __name__ == "__main__":
    key = jax.random.PRNGKey(0)
    kx, kp = jax.random.split(key)
    x = jax.random.normal(kx, (2, 3, 64, 64), dtype=jnp.float32)   # NCHW input
    params = init_params(kp)
    prep = prepare_params(params)      # one-time weight layout prep

    out = jax.block_until_ready(forward(x, prep))
    ref = jax.block_until_ready(reference_forward(x, params))

    np.testing.assert_allclose(np.asarray(out), np.asarray(ref),
                               atol=1e-4, rtol=1e-4)
    assert out.shape == (2, 2)
    print("KERNEL_OK")
</pallas_src>

<mosaic_0001>
module attributes {stable_mosaic.version = 11 : i64} {
  func.func @_conv_relu_pool_kernel(%arg0: i32, %arg1: memref<4x128x75xf32, #tpu.memory_space<vmem>>, %arg2: memref<75x128xf32, #tpu.memory_space<vmem>>, %arg3: memref<1x128xf32, #tpu.memory_space<vmem>>, %arg4: memref<128x128xf32, #tpu.memory_space<vmem>>) attributes {dimension_semantics = [#tpu.dimension_semantics<parallel>], iteration_bounds = array<i64: 4>, scalar_prefetch = 0 : i64, scratch_operands = 0 : i64, tpu.core_type = #tpu.core_type<tc>, window_params = [{transform_indices = @transform_0, window_bounds = array<i64: 4, 128, 75>}, {pipeline_mode = #tpu.pipeline_mode<synchronous>, transform_indices = @transform_1, window_bounds = array<i64: 75, 128>}, {pipeline_mode = #tpu.pipeline_mode<synchronous>, transform_indices = @transform_2, window_bounds = array<i64: 1, 128>}, {transform_indices = @transform_3, window_bounds = array<i64: 128, 128>}]} {
    %c0 = arith.constant 0 : index
    %c0_0 = arith.constant 0 : index
    %c0_1 = arith.constant 0 : index
    %0 = vector.load %arg1[%c0, %c0_0, %c0_1] : memref<4x128x75xf32, #tpu.memory_space<vmem>>, vector<4x128x75xf32>
    %1 = vector.shape_cast %0 : vector<4x128x75xf32> to vector<512x75xf32>
    %c0_2 = arith.constant 0 : index
    %c0_3 = arith.constant 0 : index
    %2 = vector.load %arg2[%c0_2, %c0_3] : memref<75x128xf32, #tpu.memory_space<vmem>>, vector<75x128xf32>
    %cst = arith.constant dense<0.000000e+00> : vector<512x128xf32>
    %3 = tpu.matmul %1, %2, %cst {dimension_numbers = #tpu.dot_dimension_numbers<[1], [0], [0], [1], [0, 0, 1, 1], [], []>} : vector<512x75xf32>, vector<75x128xf32>, vector<512x128xf32> -> vector<512x128xf32>
    %4 = vector.shape_cast %3 : vector<512x128xf32> to vector<4x128x128xf32>
    %cst_4 = arith.constant dense<0xFF800000> : vector<128x128xf32>
    %5 = vector.multi_reduction <maximumf>, %4, %cst_4 [0] : vector<4x128x128xf32> to vector<128x128xf32>
    %c0_5 = arith.constant 0 : index
    %c0_6 = arith.constant 0 : index
    %6 = vector.load %arg3[%c0_5, %c0_6] : memref<1x128xf32, #tpu.memory_space<vmem>>, vector<1x128xf32>
    %7 = vector.broadcast %6 : vector<1x128xf32> to vector<128x128xf32>
    %8 = arith.addf %5, %7 : vector<128x128xf32>
    %cst_7 = arith.constant 0.000000e+00 : f32
    %9 = vector.broadcast %cst_7 : f32 to vector<128x128xf32>
    %10 = arith.maximumf %8, %9 : vector<128x128xf32>
    %c0_8 = arith.constant 0 : index
    %c0_9 = arith.constant 0 : index
    %11 = vector.load %arg4[%c0_8, %c0_9] : memref<128x128xf32, #tpu.memory_space<vmem>>, vector<128x128xf32>
    tpu.vector_store %arg4[%c0_8, %c0_9], %10 {strides = array<i32>} : memref<128x128xf32, #tpu.memory_space<vmem>>, vector<128x128xf32>,
    return
  }
  func.func @transform_0(%arg0: i32) -> (i32, i32, i32) {
    %c0_i32 = arith.constant 0 : i32
    %c0_i32_0 = arith.constant 0 : i32
    %c0_i32_1 = arith.constant 0 : i32
    return %c0_i32, %arg0, %c0_i32_0 : i32, i32, i32
  }
  func.func @transform_1(%arg0: i32) -> (i32, i32) {
    %c0_i32 = arith.constant 0 : i32
    %c0_i32_0 = arith.constant 0 : i32
    %c0_i32_1 = arith.constant 0 : i32
    return %c0_i32, %c0_i32_0 : i32, i32
  }
  func.func @transform_2(%arg0: i32) -> (i32, i32) {
    %c0_i32 = arith.constant 0 : i32
    %c0_i32_0 = arith.constant 0 : i32
    %c0_i32_1 = arith.constant 0 : i32
    return %c0_i32, %c0_i32_0 : i32, i32
  }
  func.func @transform_3(%arg0: i32) -> (i32, i32) {
    %c0_i32 = arith.constant 0 : i32
    %c0_i32_0 = arith.constant 0 : i32
    return %arg0, %c0_i32 : i32, i32
  }
}

module attributes {stable_mosaic.version = 11 : i64} {
  func.func @_conv_relu_pool_kernel(%arg0: i32, %arg1: memref<4x16x400xf32, #tpu.memory_space<vmem>>, %arg2: memref<400x128xf32, #tpu.memory_space<vmem>>, %arg3: memref<1x128xf32, #tpu.memory_space<vmem>>, %arg4: memref<16x128xf32, #tpu.memory_space<vmem>>) attributes {dimension_semantics = [#tpu.dimension_semantics<parallel>], iteration_bounds = array<i64: 2>, scalar_prefetch = 0 : i64, scratch_operands = 0 : i64, tpu.core_type = #tpu.core_type<tc>, window_params = [{transform_indices = @transform_0, window_bounds = array<i64: 4, 16, 400>}, {pipeline_mode = #tpu.pipeline_mode<synchronous>, transform_indices = @transform_1, window_bounds = array<i64: 400, 128>}, {pipeline_mode = #tpu.pipeline_mode<synchronous>, transform_indices = @transform_2, window_bounds = array<i64: 1, 128>}, {transform_indices = @transform_3, window_bounds = array<i64: 16, 128>}]} {
    %c0 = arith.constant 0 : index
    %c0_0 = arith.constant 0 : index
    %c0_1 = arith.constant 0 : index
    %0 = vector.load %arg1[%c0, %c0_0, %c0_1] : memref<4x16x400xf32, #tpu.memory_space<vmem>>, vector<4x16x400xf32>
    %1 = vector.shape_cast %0 : vector<4x16x400xf32> to vector<64x400xf32>
    %c0_2 = arith.constant 0 : index
    %c0_3 = arith.constant 0 : index
    %2 = vector.load %arg2[%c0_2, %c0_3] : memref<400x128xf32, #tpu.memory_space<vmem>>, vector<400x128xf32>
    %cst = arith.constant dense<0.000000e+00> : vector<64x128xf32>
    %3 = tpu.matmul %1, %2, %cst {dimension_numbers = #tpu.dot_dimension_numbers<[1], [0], [0], [1], [0, 0, 1, 1], [], []>} : vector<64x400xf32>, vector<400x128xf32>, vector<64x128xf32> -> vector<64x128xf32>
    %4 = vector.shape_cast %3 : vector<64x128xf32> to vector<4x16x128xf32>
    %cst_4 = arith.constant dense<0xFF800000> : vector<16x128xf32>
    %5 = vector.multi_reduction <maximumf>, %4, %cst_4 [0] : vector<4x16x128xf32> to vector<16x128xf32>
    %c0_5 = arith.constant 0 : index
    %c0_6 = arith.constant 0 : index
    %6 = vector.load %arg3[%c0_5, %c0_6] : memref<1x128xf32, #tpu.memory_space<vmem>>, vector<1x128xf32>
    %7 = vector.broadcast %6 : vector<1x128xf32> to vector<16x128xf32>
    %8 = arith.addf %5, %7 : vector<16x128xf32>
    %cst_7 = arith.constant 0.000000e+00 : f32
    %9 = vector.broadcast %cst_7 : f32 to vector<16x128xf32>
    %10 = arith.maximumf %8, %9 : vector<16x128xf32>
    %c0_8 = arith.constant 0 : index
    %c0_9 = arith.constant 0 : index
    %11 = vector.load %arg4[%c0_8, %c0_9] : memref<16x128xf32, #tpu.memory_space<vmem>>, vector<16x128xf32>
    tpu.vector_store %arg4[%c0_8, %c0_9], %10 {strides = array<i32>} : memref<16x128xf32, #tpu.memory_space<vmem>>, vector<16x128xf32>,
    return
  }
  func.func @transform_0(%arg0: i32) -> (i32, i32, i32) {
    %c0_i32 = arith.constant 0 : i32
    %c0_i32_0 = arith.constant 0 : i32
    %c0_i32_1 = arith.constant 0 : i32
    return %c0_i32, %arg0, %c0_i32_0 : i32, i32, i32
  }
  func.func @transform_1(%arg0: i32) -> (i32, i32) {
    %c0_i32 = arith.constant 0 : i32
    %c0_i32_0 = arith.constant 0 : i32
    %c0_i32_1 = arith.constant 0 : i32
    return %c0_i32, %c0_i32_0 : i32, i32
  }
  func.func @transform_2(%arg0: i32) -> (i32, i32) {
    %c0_i32 = arith.constant 0 : i32
    %c0_i32_0 = arith.constant 0 : i32
    %c0_i32_1 = arith.constant 0 : i32
    return %c0_i32, %c0_i32_0 : i32, i32
  }
  func.func @transform_3(%arg0: i32) -> (i32, i32) {
    %c0_i32 = arith.constant 0 : i32
    %c0_i32_0 = arith.constant 0 : i32
    return %arg0, %c0_i32 : i32, i32
  }
}

module attributes {stable_mosaic.version = 11 : i64} {
  func.func @_conv_fc_kernel(%arg0: memref<8x1600xf32, #tpu.memory_space<vmem>>, %arg1: memref<1600x8xf32, #tpu.memory_space<vmem>>, %arg2: memref<1x8xf32, #tpu.memory_space<vmem>>, %arg3: memref<4x8x128xf32, #tpu.memory_space<vmem>>, %arg4: memref<1x128xf32, #tpu.memory_space<vmem>>, %arg5: memref<2x128xf32, #tpu.memory_space<vmem>>) attributes {dimension_semantics = [], scalar_prefetch = 0 : i64, scratch_operands = 0 : i64, tpu.core_type = #tpu.core_type<tc>} {
    %c0 = arith.constant 0 : index
    %c0_0 = arith.constant 0 : index
    %0 = vector.load %arg0[%c0, %c0_0] : memref<8x1600xf32, #tpu.memory_space<vmem>>, vector<8x1600xf32>
    %c0_1 = arith.constant 0 : index
    %c0_2 = arith.constant 0 : index
    %1 = vector.load %arg1[%c0_1, %c0_2] : memref<1600x8xf32, #tpu.memory_space<vmem>>, vector<1600x8xf32>
    %cst = arith.constant dense<0.000000e+00> : vector<8x8xf32>
    %2 = tpu.matmul %0, %1, %cst {dimension_numbers = #tpu.dot_dimension_numbers<[1], [0], [0], [1], [0, 0, 1, 1], [], []>} : vector<8x1600xf32>, vector<1600x8xf32>, vector<8x8xf32> -> vector<8x8xf32>
    %c0_3 = arith.constant 0 : index
    %c0_4 = arith.constant 0 : index
    %3 = vector.load %arg2[%c0_3, %c0_4] : memref<1x8xf32, #tpu.memory_space<vmem>>, vector<1x8xf32>
    %4 = vector.broadcast %3 : vector<1x8xf32> to vector<8x8xf32>
    %5 = arith.addf %2, %4 : vector<8x8xf32>
    %cst_5 = arith.constant 0.000000e+00 : f32
    %6 = vector.broadcast %cst_5 : f32 to vector<8x8xf32>
    %7 = arith.maximumf %5, %6 : vector<8x8xf32>
    %c0_6 = arith.constant 0 : index
    %c0_7 = arith.constant 0 : index
    %8 = vector.load %arg4[%c0_6, %c0_7] : memref<1x128xf32, #tpu.memory_space<vmem>>, vector<1x128xf32>
    %9 = vector.extract_strided_slice %7 {offsets = [0, 0], sizes = [2, 8], strides = [1, 1]} : vector<8x8xf32> to vector<2x8xf32>
    %c0_8 = arith.constant 0 : index
    %c0_9 = arith.constant 0 : index
    %c0_10 = arith.constant 0 : index
    %10 = vector.load %arg3[%c0_8, %c0_9, %c0_10] : memref<4x8x128xf32, #tpu.memory_space<vmem>>, vector<1x8x128xf32>
    %11 = vector.shape_cast %10 : vector<1x8x128xf32> to vector<8x128xf32>
    %cst_11 = arith.constant dense<0.000000e+00> : vector<2x128xf32>
    %12 = tpu.matmul %9, %11, %cst_11 {dimension_numbers = #tpu.dot_dimension_numbers<[1], [0], [0], [1], [0, 0, 1, 1], [], []>} : vector<2x8xf32>, vector<8x128xf32>, vector<2x128xf32> -> vector<2x128xf32>
    %13 = vector.broadcast %8 : vector<1x128xf32> to vector<2x128xf32>
    %14 = arith.addf %13, %12 : vector<2x128xf32>
    %15 = vector.extract_strided_slice %7 {offsets = [2, 0], sizes = [2, 8], strides = [1, 1]} : vector<8x8xf32> to vector<2x8xf32>
    %c1 = arith.constant 1 : index
    %c0_12 = arith.constant 0 : index
    %c0_13 = arith.constant 0 : index
    %16 = vector.load %arg3[%c1, %c0_12, %c0_13] : memref<4x8x128xf32, #tpu.memory_space<vmem>>, vector<1x8x128xf32>
    %17 = vector.shape_cast %16 : vector<1x8x128xf32> to vector<8x128xf32>
    %cst_14 = arith.constant dense<0.000000e+00> : vector<2x128xf32>
    %18 = tpu.matmul %15, %17, %cst_14 {dimension_numbers = #tpu.dot_dimension_numbers<[1], [0], [0], [1], [0, 0, 1, 1], [], []>} : vector<2x8xf32>, vector<8x128xf32>, vector<2x128xf32> -> vector<2x128xf32>
    %19 = arith.addf %14, %18 : vector<2x128xf32>
    %20 = vector.extract_strided_slice %7 {offsets = [4, 0], sizes = [2, 8], strides = [1, 1]} : vector<8x8xf32> to vector<2x8xf32>
    %c2 = arith.constant 2 : index
    %c0_15 = arith.constant 0 : index
    %c0_16 = arith.constant 0 : index
    %21 = vector.load %arg3[%c2, %c0_15, %c0_16] : memref<4x8x128xf32, #tpu.memory_space<vmem>>, vector<1x8x128xf32>
    %22 = vector.shape_cast %21 : vector<1x8x128xf32> to vector<8x128xf32>
    %cst_17 = arith.constant dense<0.000000e+00> : vector<2x128xf32>
    %23 = tpu.matmul %20, %22, %cst_17 {dimension_numbers = #tpu.dot_dimension_numbers<[1], [0], [0], [1], [0, 0, 1, 1], [], []>} : vector<2x8xf32>, vector<8x128xf32>, vector<2x128xf32> -> vector<2x128xf32>
    %24 = arith.addf %19, %23 : vector<2x128xf32>
    %25 = vector.extract_strided_slice %7 {offsets = [6, 0], sizes = [2, 8], strides = [1, 1]} : vector<8x8xf32> to vector<2x8xf32>
    %c3 = arith.constant 3 : index
    %c0_18 = arith.constant 0 : index
    %c0_19 = arith.constant 0 : index
    %26 = vector.load %arg3[%c3, %c0_18, %c0_19] : memref<4x8x128xf32, #tpu.memory_space<vmem>>, vector<1x8x128xf32>
    %27 = vector.shape_cast %26 : vector<1x8x128xf32> to vector<8x128xf32>
    %cst_20 = arith.constant dense<0.000000e+00> : vector<2x128xf32>
    %28 = tpu.matmul %25, %27, %cst_20 {dimension_numbers = #tpu.dot_dimension_numbers<[1], [0], [0], [1], [0, 0, 1, 1], [], []>} : vector<2x8xf32>, vector<8x128xf32>, vector<2x128xf32> -> vector<2x128xf32>
    %29 = arith.addf %24, %28 : vector<2x128xf32>
    %c0_21 = arith.constant 0 : index
    %c0_22 = arith.constant 0 : index
    %30 = vector.load %arg5[%c0_21, %c0_22] : memref<2x128xf32, #tpu.memory_space<vmem>>, vector<2x128xf32>
    tpu.vector_store %arg5[%c0_21, %c0_22], %29 {strides = array<i32>} : memref<2x128xf32, #tpu.memory_space<vmem>>, vector<2x128xf32>,
    return
  }
}

</mosaic_0001>

<bundles_post_ra>
// kernel: forward.3
= control target key start
LH: loop header
LB: loop body
LE: loop exit
PB: predicated region body
PF: predicated region fallthrough
CT: control target
= control target key end

     0   :  { %s1281_s12 = smov 0   ;;  %s1283_s13 = smov 0   ;;  %s1664_s0 = inlined_call_operand.vmem [shape: f32[4,512,75], index: 0, kind: input, shape index: {}]   ;;  %s1665_s1 = inlined_call_operand.vmem [shape: f32[75,128], index: 1, kind: input, shape index: {}]   ;;  %s1666_s2 = inlined_call_operand.vmem [shape: f32[1,128], index: 2, kind: input, shape index: {}]   ;;  %s1667_s3 = inlined_call_operand.vmem [shape: f32[512,128], index: 3, kind: output, shape index: {}]  }
   0x1   :  { %s1285_s14 = smov 0  }
   0x2 LB: > { %s1103_s15 = sadd.s32 4294967295, %s1259_s14   ;;  %s1298_s16 = sadd.s32 1, %s1259_s14   ;;  %s1259_s14 = sphi %s1285_s14, %s1670_s14   ;;  %s1255_s13 = sphi %s1283_s13, %s1669_s13   ;;  %s1251_s12 = sphi %s1281_s12, %s1668_s12  }
   0x3   : > { %s17_s17 = ssub.s32 %s1259_s14, %s1298_s16  ;;  %s20_s18 = sadd.s32 1, %s1255_s13 }
   0x4   : > { %p18_p0 = scmp.eq.s32.totalorder %s17_s17, 0  ;;  %p27_p1 = scmp.ne.s32.totalorder %s1255_s13, %s1251_s12 }
   0x5   : > { %p28_p2 = scmp.eq.s32.totalorder %s1259_s14, 0  ;;  %p1106_p4 = scmp.ge.s32.totalorder %s1259_s14, 4 }
   0x6   : > { %s1307_s19 = scalar_select %p18_p0, %s1255_s13, %s20_s18  }
   0x7   : > { %p29_p3 = por %p28_p2, %p27_p1  ;;  %127 = sbr.rel (%p1106_p4) target bundleno = 80 (0x50), region = 24 }
   0xc   : > { %130 = sbr.rel (!%p29_p3) target bundleno = 80 (0x50), region = 28  ;;  %s132_s20 = sand.u32 (%p29_p3), 1, %s1255_s13  }
   0xd   : > { %s1181_s21 = sshll.u32 (%p29_p3), %s1259_s14, 7  ;;  %s1107_s22 = sshll.u32 (%p29_p3), %s132_s20, 9 }
   0xe   : > { %s1315_s25 = scalar_lea.vmem (%p29_p3), %s1664_s0, %s1181_s21  ;;  %s1320_s26 = scalar_lea.vmem (%p29_p3), [#allocation2], %s1107_s22 }
   0xf   : > { %v292_v0 = vld [vmem:[%s1315_s25] sm:$0xff] (%p29_p3)  ;;  %v294_v1 = vld [vmem:[%s1315_s25 + $0x8] sm:$0xff] (%p29_p3)  ;;  %v296_v2 = vld [vmem:[%s1315_s25 + $0x10] sm:$0xff] (%p29_p3) }
  0x10   : > { %293 = vst [vmem:[%s1320_s26] sm:$0xff] (%p29_p3), %v292_v0  ;;  %v298_v3 = vld [vmem:[%s1315_s25 + $0x18] sm:$0xff] (%p29_p3)  ;;  %v300_v4 = vld [vmem:[%s1315_s25 + $0x20] sm:$0xff] (%p29_p3)  ;;  %v302_v5 = vld [vmem:[%s1315_s25 + $0x28] sm:$0xff] (%p29_p3) }
  0x11   : > { %295 = vst [vmem:[%s1320_s26 + $0x8] sm:$0xff] %v294_v1  ;;  %v304_v6 = vld [vmem:[%s1315_s25 + $0x30] sm:$0xff]  ;;  %v306_v7 = vld [vmem:[%s1315_s25 + $0x38] sm:$0xff]  ;;  %v308_v8 = vld [vmem:[%s1315_s25 + $0x40] sm:$0xff] }
  0x12   : > { %297 = vst [vmem:[%s1320_s26 + $0x10] sm:$0xff] %v296_v2  ;;  %v310_v9 = vld [vmem:[%s1315_s25 + $0x48] sm:$0xff]  ;;  %v312_v10 = vld [vmem:[%s1315_s25 + $0x50] sm:$0xff]  ;;  %v314_v11 = vld [vmem:[%s1315_s25 + $0x58] sm:$0xff] }
  0x13   : > { %299 = vst [vmem:[%s1320_s26 + $0x18] sm:$0xff] %v298_v3  ;;  %v316_v12 = vld [vmem:[%s1315_s25 + $0x60] sm:$0xff]  ;;  %v318_v13 = vld [vmem:[%s1315_s25 + $0x68] sm:$0xff]  ;;  %v320_v14 = vld [vmem:[%s1315_s25 + $0x70] sm:$0xff] }
  0x14   : > { %301 = vst [vmem:[%s1320_s26 + $0x20] sm:$0xff] %v300_v4  ;;  %v322_v15 = vld [vmem:[%s1315_s25 + $0x78] sm:$0xff]  ;;  %v324_v16 = vld [vmem:[%s1315_s25 + $0x200] sm:$0xff]  ;;  %v326_v17 = vld [vmem:[%s1315_s25 + $0x208] sm:$0xff] }
  0x15   : > { %303 = vst [vmem:[%s1320_s26 + $0x28] sm:$0xff] %v302_v5  ;;  %v328_v18 = vld [vmem:[%s1315_s25 + $0x210] sm:$0xff]  ;;  %v330_v19 = vld [vmem:[%s1315_s25 + $0x218] sm:$0xff]  ;;  %v332_v20 = vld [vmem:[%s1315_s25 + $0x220] sm:$0xff] }
  0x16   : > { %305 = vst [vmem:[%s1320_s26 + $0x30] sm:$0xff] %v304_v6  ;;  %v334_v21 = vld [vmem:[%s1315_s25 + $0x228] sm:$0xff]  ;;  %v336_v22 = vld [vmem:[%s1315_s25 + $0x230] sm:$0xff]  ;;  %v338_v23 = vld [vmem:[%s1315_s25 + $0x238] sm:$0xff] }
  0x17   : > { %307 = vst [vmem:[%s1320_s26 + $0x38] sm:$0xff] %v306_v7  ;;  %v340_v24 = vld [vmem:[%s1315_s25 + $0x240] sm:$0xff]  ;;  %v342_v25 = vld [vmem:[%s1315_s25 + $0x248] sm:$0xff]  ;;  %v344_v26 = vld [vmem:[%s1315_s25 + $0x250] sm:$0xff] }
  0x18   : > { %309 = vst [vmem:[%s1320_s26 + $0x40] sm:$0xff] %v308_v8  ;;  %v346_v27 = vld [vmem:[%s1315_s25 + $0x258] sm:$0xff]  ;;  %v348_v28 = vld [vmem:[%s1315_s25 + $0x260] sm:$0xff]  ;;  %v350_v29 = vld [vmem:[%s1315_s25 + $0x268] sm:$0xff] }
  0x19   : > { %311 = vst [vmem:[%s1320_s26 + $0x48] sm:$0xff] %v310_v9  ;;  %v352_v30 = vld [vmem:[%s1315_s25 + $0x270] sm:$0xff]  ;;  %v354_v31 = vld [vmem:[%s1315_s25 + $0x278] sm:$0xff]  ;;  %v356_v32 = vld [vmem:[%s1315_s25 + $0x400] sm:$0xff] }
  0x1a   : > { %313 = vst [vmem:[%s1320_s26 + $0x50] sm:$0xff] %v312_v10  ;;  %v358_v33 = vld [vmem:[%s1315_s25 + $0x408] sm:$0xff]  ;;  %v360_v34 = vld [vmem:[%s1315_s25 + $0x410] sm:$0xff]  ;;  %v362_v35 = vld [vmem:[%s1315_s25 + $0x418] sm:$0xff] }
  0x1b   : > { %315 = vst [vmem:[%s1320_s26 + $0x58] sm:$0xff] %v314_v11  ;;  %v364_v36 = vld [vmem:[%s1315_s25 + $0x420] sm:$0xff]  ;;  %v366_v37 = vld [vmem:[%s1315_s25 + $0x428] sm:$0xff]  ;;  %v368_v38 = vld [vmem:[%s1315_s25 + $0x430] sm:$0xff] }
  0x1c   : > { %317 = vst [vmem:[%s1320_s26 + $0x60] sm:$0xff] %v316_v12  ;;  %v370_v39 = vld [vmem:[%s1315_s25 + $0x438] sm:$0xff]  ;;  %v372_v40 = vld [vmem:[%s1315_s25 + $0x440] sm:$0xff]  ;;  %v374_v41 = vld [vmem:[%s1315_s25 + $0x448] sm:$0xff] }
  0x1d   : > { %319 = vst [vmem:[%s1320_s26 + $0x68] sm:$0xff] %v318_v13  ;;  %v376_v42 = vld [vmem:[%s1315_s25 + $0x450] sm:$0xff]  ;;  %v378_v43 = vld [vmem:[%s1315_s25 + $0x458] sm:$0xff]  ;;  %v380_v44 = vld [vmem:[%s1315_s25 + $0x460] sm:$0xff] }
  0x1e   : > { %321 = vst [vmem:[%s1320_s26 + $0x70] sm:$0xff] %v320_v14  ;;  %v382_v45 = vld [vmem:[%s1315_s25 + $0x468] sm:$0xff]  ;;  %v384_v46 = vld [vmem:[%s1315_s25 + $0x470] sm:$0xff]  ;;  %v386_v47 = vld [vmem:[%s1315_s25 + $0x478] sm:$0xff] }
  0x1f   : > { %323 = vst [vmem:[%s1320_s26 + $0x78] sm:$0xff] %v322_v15  ;;  %v388_v48 = vld [vmem:[%s1315_s25 + $0x600] sm:$0xff]  ;;  %v390_v49 = vld [vmem:[%s1315_s25 + $0x608] sm:$0xff]  ;;  %v392_v50 = vld [vmem:[%s1315_s25 + $0x610] sm:$0xff] }
  0x20   : > { %325 = vst [vmem:[%s1320_s26 + $0x80] sm:$0xff] %v324_v16  ;;  %v394_v51 = vld [vmem:[%s1315_s25 + $0x618] sm:$0xff]  ;;  %v396_v52 = vld [vmem:[%s1315_s25 + $0x620] sm:$0xff]  ;;  %v398_v53 = vld [vmem:[%s1315_s25 + $0x628] sm:$0xff] }
  0x21   : > { %327 = vst [vmem:[%s1320_s26 + $0x88] sm:$0xff] %v326_v17  ;;  %v400_v54 = vld [vmem:[%s1315_s25 + $0x630] sm:$0xff]  ;;  %v402_v55 = vld [vmem:[%s1315_s25 + $0x638] sm:$0xff]  ;;  %v404_v56 = vld [vmem:[%s1315_s25 + $0x640] sm:$0xff] }
  0x22   : > { %329 = vst [vmem:[%s1320_s26 + $0x90] sm:$0xff] %v328_v18  ;;  %v406_v57 = vld [vmem:[%s1315_s25 + $0x648] sm:$0xff]  ;;  %v408_v58 = vld [vmem:[%s1315_s25 + $0x650] sm:$0xff]  ;;  %v410_v59 = vld [vmem:[%s1315_s25 + $0x658] sm:$0xff] }
  0x23   : > { %331 = vst [vmem:[%s1320_s26 + $0x98] sm:$0xff] %v330_v19  ;;  %v412_v60 = vld [vmem:[%s1315_s25 + $0x660] sm:$0xff]  ;;  %v414_v61 = vld [vmem:[%s1315_s25 + $0x668] sm:$0xff]  ;;  %v416_v62 = vld [vmem:[%s1315_s25 + $0x670] sm:$0xff] }
  0x24   : > { %333 = vst [vmem:[%s1320_s26 + $0xa0] sm:$0xff] %v332_v20  ;;  %v418_v63 = vld [vmem:[%s1315_s25 + $0x678] sm:$0xff] }
  0x25   : > { %335 = vst [vmem:[%s1320_s26 + $0xa8] sm:$0xff] %v334_v21 }
  0x26   : > { %337 = vst [vmem:[%s1320_s26 + $0xb0] sm:$0xff] %v336_v22 }
  0x27   : > { %339 = vst [vmem:[%s1320_s26 + $0xb8] sm:$0xff] %v338_v23 }
  0x28   : > { %341 = vst [vmem:[%s1320_s26 + $0xc0] sm:$0xff] %v340_v24 }
  0x29   : > { %343 = vst [vmem:[%s1320_s26 + $0xc8] sm:$0xff] %v342_v25 }
  0x2a   : > { %345 = vst [vmem:[%s1320_s26 + $0xd0] sm:$0xff] %v344_v26 }
  0x2b   : > { %347 = vst [vmem:[%s1320_s26 + $0xd8] sm:$0xff] %v346_v27 }
  0x2c   : > { %349 = vst [vmem:[%s1320_s26 + $0xe0] sm:$0xff] %v348_v28 }
  0x2d   : > { %351 = vst [vmem:[%s1320_s26 + $0xe8] sm:$0xff] %v350_v29 }
  0x2e   : > { %353 = vst [vmem:[%s1320_s26 + $0xf0] sm:$0xff] %v352_v30 }
  0x2f   : > { %355 = vst [vmem:[%s1320_s26 + $0xf8] sm:$0xff] %v354_v31 }
  0x30   : > { %357 = vst [vmem:[%s1320_s26 + $0x100] sm:$0xff] %v356_v32 }
  0x31   : > { %359 = vst [vmem:[%s1320_s26 + $0x108] sm:$0xff] %v358_v33 }
  0x32   : > { %361 = vst [vmem:[%s1320_s26 + $0x110] sm:$0xff] %v360_v34 }
  0x33   : > { %363 = vst [vmem:[%s1320_s26 + $0x118] sm:$0xff] %v362_v35 }
  0x34   : > { %365 = vst [vmem:[%s1320_s26 + $0x120] sm:$0xff] %v364_v36 }
  0x35   : > { %367 = vst [vmem:[%s1320_s26 + $0x128] sm:$0xff] %v366_v37 }
  0x36   : > { %369 = vst [vmem:[%s1320_s26 + $0x130] sm:$0xff] %v368_v38 }
  0x37   : > { %371 = vst [vmem:[%s1320_s26 + $0x138] sm:$0xff] %v370_v39 }
  0x38   : > { %373 = vst [vmem:[%s1320_s26 + $0x140] sm:$0xff] %v372_v40 }
  0x39   : > { %375 = vst [vmem:[%s1320_s26 + $0x148] sm:$0xff] %v374_v41 }
  0x3a   : > { %377 = vst [vmem:[%s1320_s26 + $0x150] sm:$0xff] %v376_v42 }
  0x3b   : > { %379 = vst [vmem:[%s1320_s26 + $0x158] sm:$0xff] %v378_v43 }
  0x3c   : > { %381 = vst [vmem:[%s1320_s26 + $0x160] sm:$0xff] %v380_v44 }
  0x3d   : > { %383 = vst [vmem:[%s1320_s26 + $0x168] sm:$0xff] %v382_v45 }
  0x3e   : > { %385 = vst [vmem:[%s1320_s26 + $0x170] sm:$0xff] %v384_v46 }
  0x3f   : > { %387 = vst [vmem:[%s1320_s26 + $0x178] sm:$0xff] %v386_v47 }
  0x40   : > { %389 = vst [vmem:[%s1320_s26 + $0x180] sm:$0xff] %v388_v48 }
  0x41   : > { %391 = vst [vmem:[%s1320_s26 + $0x188] sm:$0xff] %v390_v49 }
  0x42   : > { %393 = vst [vmem:[%s1320_s26 + $0x190] sm:$0xff] %v392_v50 }
  0x43   : > { %395 = vst [vmem:[%s1320_s26 + $0x198] sm:$0xff] %v394_v51 }
  0x44   : > { %397 = vst [vmem:[%s1320_s26 + $0x1a0] sm:$0xff] %v396_v52 }
  0x45   : > { %399 = vst [vmem:[%s1320_s26 + $0x1a8] sm:$0xff] %v398_v53 }
  0x46   : > { %401 = vst [vmem:[%s1320_s26 + $0x1b0] sm:$0xff] %v400_v54 }
  0x47   : > { %403 = vst [vmem:[%s1320_s26 + $0x1b8] sm:$0xff] %v402_v55 }
  0x48   : > { %405 = vst [vmem:[%s1320_s26 + $0x1c0] sm:$0xff] %v404_v56 }
  0x49   : > { %407 = vst [vmem:[%s1320_s26 + $0x1c8] sm:$0xff] %v406_v57 }
  0x4a   : > { %409 = vst [vmem:[%s1320_s26 + $0x1d0] sm:$0xff] %v408_v58 }
  0x4b   : > { %411 = vst [vmem:[%s1320_s26 + $0x1d8] sm:$0xff] %v410_v59 }
  0x4c   : > { %413 = vst [vmem:[%s1320_s26 + $0x1e0] sm:$0xff] %v412_v60 }
  0x4d   : > { %415 = vst [vmem:[%s1320_s26 + $0x1e8] sm:$0xff] %v414_v61 }
  0x4e   : > { %417 = vst [vmem:[%s1320_s26 + $0x1f0] sm:$0xff] %v416_v62 }
  0x4f   : > { %419 = vst [vmem:[%s1320_s26 + $0x1f8] sm:$0xff] %v418_v63 }
  0x50 PF: > { %p1110_p5 = scmp.ge.s32.totalorder %s1259_s14, 1  ;;  %p424_p6 = scmp.lt.s32.totalorder %s1259_s14, 5 }
  0x52   : > { %p425_p7 = pnand %p1110_p5, %p424_p6 }
  0x53   : > { %s431_s17 = sand.u32 (!%p425_p7), 1, %s1251_s12   ;;  %s1112_s28 = sshll.u32 (!%p425_p7), %s1103_s15, 4 }
  0x54   : > { %428 = sbr.rel (%p425_p7) target bundleno = 370 (0x172), region = 66  ;;  %s1111_s21 = sshll.u32 (!%p425_p7), %s431_s17, 9 }
  0x55   : > { %s1480_s27 = scalar_lea.vmem (!%p425_p7), [#allocation2], %s1111_s21  ;;  %p456_p8 = scmp.lt.s32.totalorder (!%p425_p7), %s1112_s28, 63 }
  0x59   : > { %v534_v0 = vld [vmem:[%s1665_s1 + $0x48] sm:$0x7]  ;;  %vm728_vm0 = vcmask 1042432   ;;  %v533_v1 = vld [vmem:[%s1665_s1 + $0x40] sm:$0xff]  ;;  %v532_v2 = vld [vmem:[%s1665_s1 + $0x38] sm:$0xff]  ;;  %vm535_vm1 = vcmask 613376  }
  0x5a   : > { %1183 = vmatpush.msk.msra.mxu2 %vm728_vm0, %v534_v0  ;;  %1184 = vmatpush.msk.msra.mxu3 %vm728_vm0, %v534_v0  ;;  %v531_v3 = vld [vmem:[%s1665_s1 + $0x30] sm:$0xff]  ;;  %v530_v4 = vld [vmem:[%s1665_s1 + $0x28] sm:$0xff]  ;;  %v529_v5 = vld [vmem:[%s1665_s1 + $0x20] sm:$0xff]  ;;  %s1672_s28 = smov (!%p456_p8, %s1112_s28), 63 }
  0x5b   : > { %1114 = vmatpush.msk.msra.mxu0 %vm728_vm0, %v534_v0  ;;  %1182 = vmatpush.msk.msra.mxu1 %vm728_vm0, %v534_v0  ;;  %v528_v6 = vld [vmem:[%s1665_s1 + $0x18] sm:$0xff]  ;;  %v527_v7 = vld [vmem:[%s1665_s1 + $0x10] sm:$0xff]  ;;  %v526_v8 = vld [vmem:[%s1665_s1 + $0x8] sm:$0xff]  ;;  %s1113_s4 = sshll.u32 %s1672_s28, 3 }
  0x5c   : > { %1186 = vmatpush.msra.mxu2 %v533_v1  ;;  %1187 = vmatpush.msra.mxu3 %v533_v1  ;;  %v525_v9 = vld [vmem:[%s1665_s1] sm:$0xff]  ;;  %v494_v14 = vld [vmem:[%s1480_s27 + $0x108] sm:$0xff]  ;;  %v495_v18 = vld [vmem:[%s1480_s27 + $0x110] sm:$0xff]  ;;  %s1621_s5 = scalar_lea.vmem %s1667_s3, %s1113_s4 }
  0x5d   : > { %739 = vmatpush.msra.mxu0 %v533_v1  ;;  %1185 = vmatpush.msra.mxu1 %v533_v1  ;;  %v493_v10 = vld [vmem:[%s1480_s27 + $0x100] sm:$0xff]  ;;  %v510_v15 = vld [vmem:[%s1480_s27 + $0x188] sm:$0xff]  ;;  %v511_v19 = vld [vmem:[%s1480_s27 + $0x190] sm:$0xff] }
  0x5e   : > { %1189 = vmatpush.msra.mxu2 %v532_v2  ;;  %1190 = vmatpush.msra.mxu3 %v532_v2  ;;  %v509_v11 = vld [vmem:[%s1480_s27 + $0x180] sm:$0xff]  ;;  %v462_v16 = vld [vmem:[%s1480_s27 + $0x8] sm:$0xff]  ;;  %v463_v20 = vld [vmem:[%s1480_s27 + $0x10] sm:$0xff] }
  0x5f   : > { %740 = vmatpush.msra.mxu0 %v532_v2  ;;  %1188 = vmatpush.msra.mxu1 %v532_v2  ;;  %v461_v12 = vld [vmem:[%s1480_s27] sm:$0xff]  ;;  %v478_v17 = vld [vmem:[%s1480_s27 + $0x88] sm:$0xff]  ;;  %v479_v21 = vld [vmem:[%s1480_s27 + $0x90] sm:$0xff] }
  0x60   : > { %1192 = vmatpush.msra.mxu2 %v531_v3  ;;  %1193 = vmatpush.msra.mxu3 %v531_v3  ;;  %v477_v13 = vld [vmem:[%s1480_s27 + $0x80] sm:$0xff]  ;;  %v496_v22 = vld [vmem:[%s1480_s27 + $0x118] sm:$0xff]  ;;  %v498_v30 = vld [vmem:[%s1480_s27 + $0x128] sm:$0xff] }
  0x61   : > { %741 = vmatpush.msra.mxu0 %v531_v3  ;;  %1191 = vmatpush.msra.mxu1 %v531_v3  ;;  %v512_v23 = vld [vmem:[%s1480_s27 + $0x198] sm:$0xff]  ;;  %v497_v26 = vld [vmem:[%s1480_s27 + $0x120] sm:$0xff]  ;;  %v514_v31 = vld [vmem:[%s1480_s27 + $0x1a8] sm:$0xff] }
  0x62   : > { %1195 = vmatpush.msra.mxu2 %v530_v4  ;;  %1196 = vmatpush.msra.mxu3 %v530_v4  ;;  %v464_v24 = vld [vmem:[%s1480_s27 + $0x18] sm:$0xff]  ;;  %v513_v27 = vld [vmem:[%s1480_s27 + $0x1a0] sm:$0xff]  ;;  %v466_v32 = vld [vmem:[%s1480_s27 + $0x28] sm:$0xff] }
  0x63   : > { %742 = vmatpush.msra.mxu0 %v530_v4  ;;  %1194 = vmatpush.msra.mxu1 %v530_v4  ;;  %v480_v25 = vld [vmem:[%s1480_s27 + $0x98] sm:$0xff]  ;;  %v465_v28 = vld [vmem:[%s1480_s27 + $0x20] sm:$0xff]  ;;  %v482_v33 = vld [vmem:[%s1480_s27 + $0xa8] sm:$0xff] }
  0x64   : > { %1198 = vmatpush.msra.mxu2 %v529_v5  ;;  %1199 = vmatpush.msra.mxu3 %v529_v5  ;;  %v481_v29 = vld [vmem:[%s1480_s27 + $0xa0] sm:$0xff]  ;;  %v499_v34 = vld [vmem:[%s1480_s27 + $0x130] sm:$0xff]  ;;  %v500_v38 = vld [vmem:[%s1480_s27 + $0x138] sm:$0xff] }
  0x65   : > { %743 = vmatpush.msra.mxu0 %v529_v5  ;;  %1197 = vmatpush.msra.mxu1 %v529_v5  ;;  %v515_v35 = vld [vmem:[%s1480_s27 + $0x1b0] sm:$0xff]  ;;  %v516_v39 = vld [vmem:[%s1480_s27 + $0x1b8] sm:$0xff]  ;;  %v501_v42 = vld [vmem:[%s1480_s27 + $0x140] sm:$0xff] }
  0x66   : > { %1201 = vmatpush.msra.mxu2 %v528_v6  ;;  %1202 = vmatpush.msra.mxu3 %v528_v6  ;;  %v467_v36 = vld [vmem:[%s1480_s27 + $0x30] sm:$0xff]  ;;  %v468_v40 = vld [vmem:[%s1480_s27 + $0x38] sm:$0xff]  ;;  %v517_v43 = vld [vmem:[%s1480_s27 + $0x1c0] sm:$0xff] }
  0x67   : > { %744 = vmatpush.msra.mxu0 %v528_v6  ;;  %1200 = vmatpush.msra.mxu1 %v528_v6  ;;  %v483_v37 = vld [vmem:[%s1480_s27 + $0xb0] sm:$0xff]  ;;  %v484_v41 = vld [vmem:[%s1480_s27 + $0xb8] sm:$0xff]  ;;  %v469_v44 = vld [vmem:[%s1480_s27 + $0x40] sm:$0xff] }
  0x68   : > { %1204 = vmatpush.msra.mxu2 %v527_v7  ;;  %1205 = vmatpush.msra.mxu3 %v527_v7  ;;  %v485_v45 = vld [vmem:[%s1480_s27 + $0xc0] sm:$0xff]  ;;  %v502_v46 = vld [vmem:[%s1480_s27 + $0x148] sm:$0xff]  ;;  %v503_v50 = vld [vmem:[%s1480_s27 + $0x150] sm:$0xff] }
  0x69   : > { %745 = vmatpush.msra.mxu0 %v527_v7  ;;  %1203 = vmatpush.msra.mxu1 %v527_v7  ;;  %v518_v47 = vld [vmem:[%s1480_s27 + $0x1c8] sm:$0xff]  ;;  %v519_v51 = vld [vmem:[%s1480_s27 + $0x1d0] sm:$0xff]  ;;  %v504_v54 = vld [vmem:[%s1480_s27 + $0x158] sm:$0xff] }
  0x6a   : > { %1207 = vmatpush.msra.mxu2 %v526_v8  ;;  %1208 = vmatpush.msra.mxu3 %v526_v8  ;;  %v470_v48 = vld [vmem:[%s1480_s27 + $0x48] sm:$0xff]  ;;  %v471_v52 = vld [vmem:[%s1480_s27 + $0x50] sm:$0xff]  ;;  %v520_v55 = vld [vmem:[%s1480_s27 + $0x1d8] sm:$0xff] }
  0x6b   : > { %746 = vmatpush.msra.mxu0 %v526_v8  ;;  %1206 = vmatpush.msra.mxu1 %v526_v8  ;;  %v486_v49 = vld [vmem:[%s1480_s27 + $0xc8] sm:$0xff]  ;;  %v487_v53 = vld [vmem:[%s1480_s27 + $0xd0] sm:$0xff]  ;;  %v472_v56 = vld [vmem:[%s1480_s27 + $0x58] sm:$0xff] }
  0x6c   : > { %1210 = vmatpush.msra.mxu2 %v525_v9  ;;  %1211 = vmatpush.msra.mxu3 %v525_v9  ;;  %v488_v57 = vld [vmem:[%s1480_s27 + $0xd8] sm:$0xff]  ;;  %v505_v58 = vld [vmem:[%s1480_s27 + $0x160] sm:$0xff]  ;;  %v506_v62 = vld [vmem:[%s1480_s27 + $0x168] sm:$0xff] }
  0x6d   : > { %1147 = vmatmul.msk.f32.vlgmr.msra.gmra.mxu2 %vm535_vm1, %v493_v10  ;;  %1163 = vmatmul.msk.f32.vlgmr.msra.gmra.mxu3 %vm535_vm1, %v509_v11  ;;  %v521_v59 = vld [vmem:[%s1480_s27 + $0x1e0] sm:$0xff]  ;;  %v522_v63 = vld [vmem:[%s1480_s27 + $0x1e8] sm:$0xff]  ;;  %v507_v2 = vld [vmem:[%s1480_s27 + $0x170] sm:$0xff] }
  0x6e   : > { %747 = vmatpush.msra.mxu0 %v525_v9  ;;  %1209 = vmatpush.msra.mxu1 %v525_v9  ;;  %v473_v60 = vld [vmem:[%s1480_s27 + $0x60] sm:$0xff]  ;;  %v474_v0 = vld [vmem:[%s1480_s27 + $0x68] sm:$0xff]  ;;  %v523_v3 = vld [vmem:[%s1480_s27 + $0x1f0] sm:$0xff] }
  0x6f   : > { %1115 = vmatmul.msk.f32.vlgmr.msra.gmra.mxu0 %vm535_vm1, %v461_v12  ;;  %1131 = vmatmul.msk.f32.vlgmr.msra.gmra.mxu1 %vm535_vm1, %v477_v13  ;;  %v489_v61 = vld [vmem:[%s1480_s27 + $0xe0] sm:$0xff]  ;;  %v490_v1 = vld [vmem:[%s1480_s27 + $0xe8] sm:$0xff]  ;;  %v475_v4 = vld [vmem:[%s1480_s27 + $0x70] sm:$0xff] }
  0x70   : > { %v491_v5 = vld [vmem:[%s1480_s27 + $0xf0] sm:$0xff]  ;;  %v508_v6 = vld [vmem:[%s1480_s27 + $0x178] sm:$0xff] }
  0x71   : > { %v524_v7 = vld [vmem:[%s1480_s27 + $0x1f8] sm:$0xff] }
  0x72   : > { %v476_v8 = vld [vmem:[%s1480_s27 + $0x78] sm:$0xff] }
  0x73   : > { %v492_v9 = vld [vmem:[%s1480_s27 + $0xf8] sm:$0xff] }
  0x75   : > { %1148 = vmatmul.msk.f32.gmra.mxu2 %vm535_vm1, %v494_v14  ;;  %1164 = vmatmul.msk.f32.gmra.mxu3 %vm535_vm1, %v510_v15 }
  0x77   : > { %1116 = vmatmul.msk.f32.gmra.mxu0 %vm535_vm1, %v462_v16  ;;  %1132 = vmatmul.msk.f32.gmra.mxu1 %vm535_vm1, %v478_v17  ;;  %v1615_v16 = vld [vmem:[%s1666_s2] ss:$0 sm:$0xff] }
  0x7d   : > { %1149 = vmatmul.msk.f32.gmra.mxu2 %vm535_vm1, %v495_v18  ;;  %1165 = vmatmul.msk.f32.gmra.mxu3 %vm535_vm1, %v511_v19 }
  0x7f   : > { %1117 = vmatmul.msk.f32.gmra.mxu0 %vm535_vm1, %v463_v20  ;;  %1133 = vmatmul.msk.f32.gmra.mxu1 %vm535_vm1, %v479_v21 }
  0x85   : > { %1150 = vmatmul.msk.f32.gmra.mxu2 %vm535_vm1, %v496_v22  ;;  %1166 = vmatmul.msk.f32.gmra.mxu3 %vm535_vm1, %v512_v23 }
  0x87   : > { %1118 = vmatmul.msk.f32.gmra.mxu0 %vm535_vm1, %v464_v24  ;;  %1134 = vmatmul.msk.f32.gmra.mxu1 %vm535_vm1, %v480_v25 }
  0x8d   : > { %1151 = vmatmul.msk.f32.gmra.mxu2 %vm535_vm1, %v497_v26  ;;  %1167 = vmatmul.msk.f32.gmra.mxu3 %vm535_vm1, %v513_v27 }
  0x8f   : > { %1119 = vmatmul.msk.f32.gmra.mxu0 %vm535_vm1, %v465_v28  ;;  %1135 = vmatmul.msk.f32.gmra.mxu1 %vm535_vm1, %v481_v29 }
  0x95   : > { %1152 = vmatmul.msk.f32.gmra.mxu2 %vm535_vm1, %v498_v30  ;;  %1168 = vmatmul.msk.f32.gmra.mxu3 %vm535_vm1, %v514_v31 }
  0x97   : > { %1120 = vmatmul.msk.f32.gmra.mxu0 %vm535_vm1, %v466_v32  ;;  %1136 = vmatmul.msk.f32.gmra.mxu1 %vm535_vm1, %v482_v33 }
  0x9d   : > { %1153 = vmatmul.msk.f32.gmra.mxu2 %vm535_vm1, %v499_v34  ;;  %1169 = vmatmul.msk.f32.gmra.mxu3 %vm535_vm1, %v515_v35 }
  0x9f   : > { %1121 = vmatmul.msk.f32.gmra.mxu0 %vm535_vm1, %v467_v36  ;;  %1137 = vmatmul.msk.f32.gmra.mxu1 %vm535_vm1, %v483_v37 }
  0xa5   : > { %1154 = vmatmul.msk.f32.gmra.mxu2 %vm535_vm1, %v500_v38  ;;  %1170 = vmatmul.msk.f32.gmra.mxu3 %vm535_vm1, %v516_v39 }
  0xa7   : > { %1122 = vmatmul.msk.f32.gmra.mxu0 %vm535_vm1, %v468_v40  ;;  %1138 = vmatmul.msk.f32.gmra.mxu1 %vm535_vm1, %v484_v41 }
  0xad   : > { %1155 = vmatmul.msk.f32.gmra.mxu2 %vm535_vm1, %v501_v42  ;;  %1171 = vmatmul.msk.f32.gmra.mxu3 %vm535_vm1, %v517_v43 }
  0xaf   : > { %1123 = vmatmul.msk.f32.gmra.mxu0 %vm535_vm1, %v469_v44  ;;  %1139 = vmatmul.msk.f32.gmra.mxu1 %vm535_vm1, %v485_v45 }
  0xb5   : > { %1156 = vmatmul.msk.f32.gmra.mxu2 %vm535_vm1, %v502_v46  ;;  %1172 = vmatmul.msk.f32.gmra.mxu3 %vm535_vm1, %v518_v47 }
  0xb7   : > { %1124 = vmatmul.msk.f32.gmra.mxu0 %vm535_vm1, %v470_v48  ;;  %1140 = vmatmul.msk.f32.gmra.mxu1 %vm535_vm1, %v486_v49 }
  0xbd   : > { %1157 = vmatmul.msk.f32.gmra.mxu2 %vm535_vm1, %v503_v50  ;;  %1173 = vmatmul.msk.f32.gmra.mxu3 %vm535_vm1, %v519_v51 }
  0xbf   : > { %1125 = vmatmul.msk.f32.gmra.mxu0 %vm535_vm1, %v471_v52  ;;  %1141 = vmatmul.msk.f32.gmra.mxu1 %vm535_vm1, %v487_v53 }
  0xc5   : > { %1158 = vmatmul.msk.f32.gmra.mxu2 %vm535_vm1, %v504_v54  ;;  %1174 = vmatmul.msk.f32.gmra.mxu3 %vm535_vm1, %v520_v55 }
  0xc7   : > { %1126 = vmatmul.msk.f32.gmra.mxu0 %vm535_vm1, %v472_v56  ;;  %1142 = vmatmul.msk.f32.gmra.mxu1 %vm535_vm1, %v488_v57 }
  0xcd   : > { %1159 = vmatmul.msk.f32.gmra.mxu2 %vm535_vm1, %v505_v58  ;;  %1175 = vmatmul.msk.f32.gmra.mxu3 %vm535_vm1, %v521_v59 }
  0xcf   : > { %1127 = vmatmul.msk.f32.gmra.mxu0 %vm535_vm1, %v473_v60  ;;  %1143 = vmatmul.msk.f32.gmra.mxu1 %vm535_vm1, %v489_v61 }
  0xd5   : > { %1160 = vmatmul.msk.f32.gmra.mxu2 %vm535_vm1, %v506_v62  ;;  %1176 = vmatmul.msk.f32.gmra.mxu3 %vm535_vm1, %v522_v63 }
  0xd7   : > { %1128 = vmatmul.msk.f32.gmra.mxu0 %vm535_vm1, %v474_v0  ;;  %1144 = vmatmul.msk.f32.gmra.mxu1 %vm535_vm1, %v490_v1 }
  0xdd   : > { %1161 = vmatmul.msk.f32.gmra.mxu2 %vm535_vm1, %v507_v2  ;;  %1177 = vmatmul.msk.f32.gmra.mxu3 %vm535_vm1, %v523_v3 }
  0xdf   : > { %1129 = vmatmul.msk.f32.gmra.mxu0 %vm535_vm1, %v475_v4  ;;  %1145 = vmatmul.msk.f32.gmra.mxu1 %vm535_vm1, %v491_v5 }
  0xe5   : > { %1162 = vmatmul.msk.f32.gmra.mxu2 %vm535_vm1, %v508_v6  ;;  %1178 = vmatmul.msk.f32.gmra.mxu3 %vm535_vm1, %v524_v7 }
  0xe7   : > { %1130 = vmatmul.msk.f32.gmra.mxu0 %vm535_vm1, %v476_v8  ;;  %1146 = vmatmul.msk.f32.gmra.mxu1 %vm535_vm1, %v492_v9 }
  0xec   : > { %v749_v10 = vpop.f32.mrf.mxu0  ;;  %v797_v11 = vpop.f32.mrf.mxu1 }
  0xed   : > { %v941_v12 = vmax.f32 %v749_v10, %v797_v11 }
  0xf0   : > { %v845_v13 = vpop.f32.mrf.mxu2  ;;  %v893_v14 = vpop.f32.mrf.mxu3 }
  0xf1   : > { %v942_v15 = vmax.f32 %v941_v12, %v845_v13 }
  0xf3   : > { %v943_v17 = vmax.f32 %v942_v15, %v893_v14 }
  0xf4   : > { %v752_v18 = vpop.f32.mrf.mxu0  ;;  %v800_v19 = vpop.f32.mrf.mxu1 }
  0xf5   : > { %v993_v20 = vadd.f32 %v1615_v16, %v943_v17  ;;  %v944_v21 = vmax.f32 %v752_v18, %v800_v19 }
  0xf7   : > { %v1009_v22 = vmax.f32 %v993_v20, 0.0 }
  0xf8   : > { %v848_v23 = vpop.f32.mrf.mxu2  ;;  %v896_v24 = vpop.f32.mrf.mxu3 }
  0xf9   : > { %1025 = vst [vmem:[%s1621_s5] sm:$0xff] %v1009_v22  ;;  %v945_v25 = vmax.f32 %v944_v21, %v848_v23 }
  0xfb   : > { %v946_v26 = vmax.f32 %v945_v25, %v896_v24 }
  0xfc   : > { %v755_v27 = vpop.f32.mrf.mxu0  ;;  %v803_v28 = vpop.f32.mrf.mxu1 }
  0xfd   : > { %v994_v29 = vadd.f32 %v1615_v16, %v946_v26  ;;  %v947_v30 = vmax.f32 %v755_v27, %v803_v28 }
  0xff   : > { %v1010_v31 = vmax.f32 %v994_v29, 0.0 }
 0x100   : > { %v851_v32 = vpop.f32.mrf.mxu2  ;;  %v899_v33 = vpop.f32.mrf.mxu3 }
 0x101   : > { %1026 = vst [vmem:[%s1621_s5 + $0x8] sm:$0xff] %v1010_v31  ;;  %v948_v34 = vmax.f32 %v947_v30, %v851_v32 }
 0x103   : > { %v949_v35 = vmax.f32 %v948_v34, %v899_v33 }
 0x104   : > { %v758_v36 = vpop.f32.mrf.mxu0  ;;  %v806_v37 = vpop.f32.mrf.mxu1 }
 0x105   : > { %v995_v38 = vadd.f32 %v1615_v16, %v949_v35  ;;  %v950_v39 = vmax.f32 %v758_v36, %v806_v37 }
 0x107   : > { %v1011_v40 = vmax.f32 %v995_v38, 0.0 }
 0x108   : > { %v854_v41 = vpop.f32.mrf.mxu2  ;;  %v902_v42 = vpop.f32.mrf.mxu3 }
 0x109   : > { %1027 = vst [vmem:[%s1621_s5 + $0x10] sm:$0xff] %v1011_v40  ;;  %v951_v43 = vmax.f32 %v950_v39, %v854_v41 }
 0x10b   : > { %v952_v44 = vmax.f32 %v951_v43, %v902_v42 }
 0x10c   : > { %v761_v45 = vpop.f32.mrf.mxu0  ;;  %v809_v46 = vpop.f32.mrf.mxu1 }
 0x10d   : > { %v996_v47 = vadd.f32 %v1615_v16, %v952_v44  ;;  %v953_v48 = vmax.f32 %v761_v45, %v809_v46 }
 0x10f   : > { %v1012_v49 = vmax.f32 %v996_v47, 0.0 }
 0x110   : > { %v857_v50 = vpop.f32.mrf.mxu2  ;;  %v905_v51 = vpop.f32.mrf.mxu3 }
 0x111   : > { %1028 = vst [vmem:[%s1621_s5 + $0x18] sm:$0xff] %v1012_v49  ;;  %v954_v52 = vmax.f32 %v953_v48, %v857_v50 }
 0x113   : > { %v955_v53 = vmax.f32 %v954_v52, %v905_v51 }
 0x114   : > { %v764_v54 = vpop.f32.mrf.mxu0  ;;  %v812_v55 = vpop.f32.mrf.mxu1 }
 0x115   : > { %v997_v56 = vadd.f32 %v1615_v16, %v955_v53  ;;  %v956_v57 = vmax.f32 %v764_v54, %v812_v55 }
 0x117   : > { %v1013_v58 = vmax.f32 %v997_v56, 0.0 }
 0x118   : > { %v860_v59 = vpop.f32.mrf.mxu2  ;;  %v908_v60 = vpop.f32.mrf.mxu3 }
 0x119   : > { %1029 = vst [vmem:[%s1621_s5 + $0x20] sm:$0xff] %v1013_v58  ;;  %v957_v61 = vmax.f32 %v956_v57, %v860_v59 }
 0x11b   : > { %v958_v62 = vmax.f32 %v957_v61, %v908_v60 }
 0x11c   : > { %v767_v63 = vpop.f32.mrf.mxu0  ;;  %v815_v0 = vpop.f32.mrf.mxu1 }
 0x11d   : > { %v998_v1 = vadd.f32 %v1615_v16, %v958_v62  ;;  %v959_v2 = vmax.f32 %v767_v63, %v815_v0 }
 0x11f   : > { %v1014_v3 = vmax.f32 %v998_v1, 0.0 }
 0x120   : > { %v863_v4 = vpop.f32.mrf.mxu2  ;;  %v911_v5 = vpop.f32.mrf.mxu3 }
 0x121   : > { %1030 = vst [vmem:[%s1621_s5 + $0x28] sm:$0xff] %v1014_v3  ;;  %v960_v6 = vmax.f32 %v959_v2, %v863_v4 }
 0x123   : > { %v961_v7 = vmax.f32 %v960_v6, %v911_v5 }
 0x124   : > { %v770_v8 = vpop.f32.mrf.mxu0  ;;  %v818_v9 = vpop.f32.mrf.mxu1 }
 0x125   : > { %v999_v10 = vadd.f32 %v1615_v16, %v961_v7  ;;  %v962_v11 = vmax.f32 %v770_v8, %v818_v9 }
 0x127   : > { %v1015_v12 = vmax.f32 %v999_v10, 0.0 }
 0x128   : > { %v866_v13 = vpop.f32.mrf.mxu2  ;;  %v914_v14 = vpop.f32.mrf.mxu3 }
 0x129   : > { %1031 = vst [vmem:[%s1621_s5 + $0x30] sm:$0xff] %v1015_v12  ;;  %v963_v15 = vmax.f32 %v962_v11, %v866_v13 }
 0x12b   : > { %v964_v17 = vmax.f32 %v963_v15, %v914_v14 }
 0x12c   : > { %v773_v18 = vpop.f32.mrf.mxu0  ;;  %v821_v19 = vpop.f32.mrf.mxu1 }
 0x12d   : > { %v1000_v20 = vadd.f32 %v1615_v16, %v964_v17  ;;  %v965_v21 = vmax.f32 %v773_v18, %v821_v19 }
 0x12f   : > { %v1016_v22 = vmax.f32 %v1000_v20, 0.0 }
 0x130   : > { %v869_v23 = vpop.f32.mrf.mxu2  ;;  %v917_v24 = vpop.f32.mrf.mxu3 }
 0x131   : > { %1032 = vst [vmem:[%s1621_s5 + $0x38] sm:$0xff] %v1016_v22  ;;  %v966_v25 = vmax.f32 %v965_v21, %v869_v23 }
 0x133   : > { %v967_v26 = vmax.f32 %v966_v25, %v917_v24 }
 0x134   : > { %v776_v27 = vpop.f32.mrf.mxu0  ;;  %v824_v28 = vpop.f32.mrf.mxu1 }
 0x135   : > { %v1001_v29 = vadd.f32 %v1615_v16, %v967_v26  ;;  %v968_v30 = vmax.f32 %v776_v27, %v824_v28 }
 0x137   : > { %v1017_v31 = vmax.f32 %v1001_v29, 0.0 }
 0x138   : > { %v872_v32 = vpop.f32.mrf.mxu2  ;;  %v920_v33 = vpop.f32.mrf.mxu3 }
 0x139   : > { %1033 = vst [vmem:[%s1621_s5 + $0x40] sm:$0xff] %v1017_v31  ;;  %v969_v34 = vmax.f32 %v968_v30, %v872_v32 }
 0x13b   : > { %v970_v35 = vmax.f32 %v969_v34, %v920_v33 }
 0x13c   : > { %v779_v36 = vpop.f32.mrf.mxu0  ;;  %v827_v37 = vpop.f32.mrf.mxu1 }
 0x13d   : > { %v1002_v38 = vadd.f32 %v1615_v16, %v970_v35  ;;  %v971_v39 = vmax.f32 %v779_v36, %v827_v37 }
 0x13f   : > { %v1018_v40 = vmax.f32 %v1002_v38, 0.0 }
 0x140   : > { %v875_v41 = vpop.f32.mrf.mxu2  ;;  %v923_v42 = vpop.f32.mrf.mxu3 }
 0x141   : > { %1034 = vst [vmem:[%s1621_s5 + $0x48] sm:$0xff] %v1018_v40  ;;  %v972_v43 = vmax.f32 %v971_v39, %v875_v41 }
 0x143   : > { %v973_v44 = vmax.f32 %v972_v43, %v923_v42 }
 0x144   : > { %v782_v45 = vpop.f32.mrf.mxu0  ;;  %v830_v46 = vpop.f32.mrf.mxu1 }
 0x145   : > { %v1003_v47 = vadd.f32 %v1615_v16, %v973_v44  ;;  %v974_v48 = vmax.f32 %v782_v45, %v830_v46 }
 0x147   : > { %v1019_v49 = vmax.f32 %v1003_v47, 0.0 }
 0x148   : > { %v878_v50 = vpop.f32.mrf.mxu2  ;;  %v926_v51 = vpop.f32.mrf.mxu3 }
 0x149   : > { %1035 = vst [vmem:[%s1621_s5 + $0x50] sm:$0xff] %v1019_v49  ;;  %v975_v52 = vmax.f32 %v974_v48, %v878_v50 }
 0x14b   : > { %v976_v53 = vmax.f32 %v975_v52, %v926_v51 }
 0x14c   : > { %v785_v54 = vpop.f32.mrf.mxu0  ;;  %v833_v55 = vpop.f32.mrf.mxu1 }
 0x14d   : > { %v1004_v56 = vadd.f32 %v1615_v16, %v976_v53  ;;  %v977_v57 = vmax.f32 %v785_v54, %v833_v55 }
 0x14f   : > { %v1020_v58 = vmax.f32 %v1004_v56, 0.0 }
 0x150   : > { %v881_v59 = vpop.f32.mrf.mxu2  ;;  %v929_v60 = vpop.f32.mrf.mxu3 }
 0x151   : > { %1036 = vst [vmem:[%s1621_s5 + $0x58] sm:$0xff] %v1020_v58  ;;  %v978_v61 = vmax.f32 %v977_v57, %v881_v59 }
 0x153   : > { %v979_v62 = vmax.f32 %v978_v61, %v929_v60 }
 0x154   : > { %v788_v63 = vpop.f32.mrf.mxu0  ;;  %v836_v0 = vpop.f32.mrf.mxu1 }
 0x155   : > { %v1005_v1 = vadd.f32 %v1615_v16, %v979_v62  ;;  %v980_v2 = vmax.f32 %v788_v63, %v836_v0 }
 0x157   : > { %v1021_v3 = vmax.f32 %v1005_v1, 0.0 }
 0x158   : > { %v884_v4 = vpop.f32.mrf.mxu2  ;;  %v932_v5 = vpop.f32.mrf.mxu3 }
 0x159   : > { %1037 = vst [vmem:[%s1621_s5 + $0x60] sm:$0xff] %v1021_v3  ;;  %v981_v6 = vmax.f32 %v980_v2, %v884_v4 }
 0x15b   : > { %v982_v7 = vmax.f32 %v981_v6, %v932_v5 }
 0x15c   : > { %v791_v8 = vpop.f32.mrf.mxu0  ;;  %v839_v9 = vpop.f32.mrf.mxu1 }
 0x15d   : > { %v1006_v10 = vadd.f32 %v1615_v16, %v982_v7  ;;  %v983_v11 = vmax.f32 %v791_v8, %v839_v9 }
 0x15f   : > { %v1022_v12 = vmax.f32 %v1006_v10, 0.0 }
 0x160   : > { %v887_v13 = vpop.f32.mrf.mxu2  ;;  %v935_v14 = vpop.f32.mrf.mxu3 }
 0x161   : > { %1038 = vst [vmem:[%s1621_s5 + $0x68] sm:$0xff] %v1022_v12  ;;  %v984_v15 = vmax.f32 %v983_v11, %v887_v13 }
 0x163   : > { %v985_v17 = vmax.f32 %v984_v15, %v935_v14 }
 0x164   : > { %v794_v18 = vpop.f32.mrf.mxu0  ;;  %v842_v19 = vpop.f32.mrf.mxu1 }
 0x165   : > { %v1007_v20 = vadd.f32 %v1615_v16, %v985_v17  ;;  %v986_v21 = vmax.f32 %v794_v18, %v842_v19 }
 0x167   : > { %v1023_v22 = vmax.f32 %v1007_v20, 0.0 }
 0x168   : > { %v890_v23 = vpop.f32.mrf.mxu2  ;;  %v938_v24 = vpop.f32.mrf.mxu3 }
 0x169   : > { %1039 = vst [vmem:[%s1621_s5 + $0x70] sm:$0xff] %v1023_v22  ;;  %v987_v25 = vmax.f32 %v986_v21, %v890_v23 }
 0x16b   : > { %v988_v26 = vmax.f32 %v987_v25, %v938_v24 }
 0x16d   : > { %v1008_v27 = vadd.f32 %v1615_v16, %v988_v26 }
 0x16f   : > { %v1024_v28 = vmax.f32 %v1008_v27, 0.0 }
 0x171   : > { %1040 = vst [vmem:[%s1621_s5 + $0x78] sm:$0xff] %v1024_v28 }
 0x172 PF: > { %p10_p9 = scmp.ge.s32.totalorder %s1298_s16, 6   ;;  %s1668_s12 = smov %s1255_s13 }
 0x173   : > { %s1669_s13 = smov %s1307_s19  ;;  %s1670_s14 = smov %s1298_s16 }
 0x174   :  { %12 = sbr.rel (!%p10_p9) target bundleno = 2 (0x2), region = 105 }

// kernel: forward.4
= control target key start
LH: loop header
LB: loop body
LE: loop exit
PB: predicated region body
PF: predicated region fallthrough
CT: control target
= control target key end

     0   :  { %s698_s12 = smov 0   ;;  %s700_s13 = smov 0   ;;  %s1013_s0 = inlined_call_operand.vmem [shape: f32[4,32,400], index: 0, kind: input, shape index: {}]   ;;  %s1014_s1 = inlined_call_operand.vmem [shape: f32[400,128], index: 1, kind: input, shape index: {}]   ;;  %s1015_s2 = inlined_call_operand.vmem [shape: f32[1,128], index: 2, kind: input, shape index: {}]   ;;  %s1016_s3 = inlined_call_operand.vmem [shape: f32[32,128], index: 3, kind: output, shape index: {}]  }
   0x1   :  { %s702_s14 = smov 0  }
   0x2 LB: > { %s605_s15 = sadd.s32 4294967295, %s676_s14   ;;  %s715_s16 = sadd.s32 1, %s676_s14   ;;  %s676_s14 = sphi %s702_s14, %s1019_s14   ;;  %s672_s13 = sphi %s700_s13, %s1018_s13   ;;  %s668_s12 = sphi %s698_s12, %s1017_s12  }
   0x3   : > { %s17_s17 = ssub.s32 %s676_s14, %s715_s16  ;;  %s20_s18 = sadd.s32 1, %s672_s13 }
   0x4   : > { %p18_p0 = scmp.eq.s32.totalorder %s17_s17, 0  ;;  %p27_p1 = scmp.ne.s32.totalorder %s672_s13, %s668_s12 }
   0x5   : > { %p28_p2 = scmp.eq.s32.totalorder %s676_s14, 0  ;;  %p608_p4 = scmp.ge.s32.totalorder %s676_s14, 2 }
   0x6   : > { %s724_s19 = scalar_select %p18_p0, %s672_s13, %s20_s18  }
   0x7   : > { %p29_p3 = por %p28_p2, %p27_p1  ;;  %127 = sbr.rel (%p608_p4) target bundleno = 48 (0x30), region = 24 }
   0xc   : > { %130 = sbr.rel (!%p29_p3) target bundleno = 48 (0x30), region = 28  ;;  %s132_s20 = sand.u32 (%p29_p3), 1, %s672_s13  }
   0xd   : > { %s628_s21 = sshll.u32 (%p29_p3), %s676_s14, 6  ;;  %s609_s22 = sshll.u32 (%p29_p3), %s132_s20, 8 }
   0xe   : > { %s732_s25 = scalar_lea.vmem (%p29_p3), %s1013_s0, %s628_s21  ;;  %s737_s26 = scalar_lea.vmem (%p29_p3), [#allocation2], %s609_s22 }
   0xf   : > { %v151_v0 = vld [vmem:[%s732_s25] sm:$0xff] (%p29_p3)  ;;  %v153_v1 = vld [vmem:[%s732_s25 + $0x8] sm:$0xff] (%p29_p3)  ;;  %v155_v2 = vld [vmem:[%s732_s25 + $0x10] sm:$0xff] (%p29_p3) }
  0x10   : > { %152 = vst [vmem:[%s737_s26] sm:$0xff] (%p29_p3), %v151_v0  ;;  %v157_v3 = vld [vmem:[%s732_s25 + $0x18] sm:$0xff] (%p29_p3)  ;;  %v159_v4 = vld [vmem:[%s732_s25 + $0x20] sm:$0xff] (%p29_p3)  ;;  %v161_v5 = vld [vmem:[%s732_s25 + $0x28] sm:$0xff] (%p29_p3) }
  0x11   : > { %154 = vst [vmem:[%s737_s26 + $0x8] sm:$0xff] %v153_v1  ;;  %v163_v6 = vld [vmem:[%s732_s25 + $0x30] sm:$0xff]  ;;  %v165_v7 = vld [vmem:[%s732_s25 + $0x38] sm:$0xff]  ;;  %v167_v8 = vld [vmem:[%s732_s25 + $0x80] sm:$0xff] }
  0x12   : > { %156 = vst [vmem:[%s737_s26 + $0x10] sm:$0xff] %v155_v2  ;;  %v169_v9 = vld [vmem:[%s732_s25 + $0x88] sm:$0xff]  ;;  %v171_v10 = vld [vmem:[%s732_s25 + $0x90] sm:$0xff]  ;;  %v173_v11 = vld [vmem:[%s732_s25 + $0x98] sm:$0xff] }
  0x13   : > { %158 = vst [vmem:[%s737_s26 + $0x18] sm:$0xff] %v157_v3  ;;  %v175_v12 = vld [vmem:[%s732_s25 + $0xa0] sm:$0xff]  ;;  %v177_v13 = vld [vmem:[%s732_s25 + $0xa8] sm:$0xff]  ;;  %v179_v14 = vld [vmem:[%s732_s25 + $0xb0] sm:$0xff] }
  0x14   : > { %160 = vst [vmem:[%s737_s26 + $0x20] sm:$0xff] %v159_v4  ;;  %v181_v15 = vld [vmem:[%s732_s25 + $0xb8] sm:$0xff]  ;;  %v183_v16 = vld [vmem:[%s732_s25 + $0x100] sm:$0xff]  ;;  %v185_v17 = vld [vmem:[%s732_s25 + $0x108] sm:$0xff] }
  0x15   : > { %162 = vst [vmem:[%s737_s26 + $0x28] sm:$0xff] %v161_v5  ;;  %v187_v18 = vld [vmem:[%s732_s25 + $0x110] sm:$0xff]  ;;  %v189_v19 = vld [vmem:[%s732_s25 + $0x118] sm:$0xff]  ;;  %v191_v20 = vld [vmem:[%s732_s25 + $0x120] sm:$0xff] }
  0x16   : > { %164 = vst [vmem:[%s737_s26 + $0x30] sm:$0xff] %v163_v6  ;;  %v193_v21 = vld [vmem:[%s732_s25 + $0x128] sm:$0xff]  ;;  %v195_v22 = vld [vmem:[%s732_s25 + $0x130] sm:$0xff]  ;;  %v197_v23 = vld [vmem:[%s732_s25 + $0x138] sm:$0xff] }
  0x17   : > { %166 = vst [vmem:[%s737_s26 + $0x38] sm:$0xff] %v165_v7  ;;  %v199_v24 = vld [vmem:[%s732_s25 + $0x180] sm:$0xff]  ;;  %v201_v25 = vld [vmem:[%s732_s25 + $0x188] sm:$0xff]  ;;  %v203_v26 = vld [vmem:[%s732_s25 + $0x190] sm:$0xff] }
  0x18   : > { %168 = vst [vmem:[%s737_s26 + $0x40] sm:$0xff] %v167_v8  ;;  %v205_v27 = vld [vmem:[%s732_s25 + $0x198] sm:$0xff]  ;;  %v207_v28 = vld [vmem:[%s732_s25 + $0x1a0] sm:$0xff]  ;;  %v209_v29 = vld [vmem:[%s732_s25 + $0x1a8] sm:$0xff] }
  0x19   : > { %170 = vst [vmem:[%s737_s26 + $0x48] sm:$0xff] %v169_v9  ;;  %v211_v30 = vld [vmem:[%s732_s25 + $0x1b0] sm:$0xff]  ;;  %v213_v31 = vld [vmem:[%s732_s25 + $0x1b8] sm:$0xff] }
  0x1a   : > { %172 = vst [vmem:[%s737_s26 + $0x50] sm:$0xff] %v171_v10 }
  0x1b   : > { %174 = vst [vmem:[%s737_s26 + $0x58] sm:$0xff] %v173_v11 }
  0x1c   : > { %176 = vst [vmem:[%s737_s26 + $0x60] sm:$0xff] %v175_v12 }
  0x1d   : > { %178 = vst [vmem:[%s737_s26 + $0x68] sm:$0xff] %v177_v13 }
  0x1e   : > { %180 = vst [vmem:[%s737_s26 + $0x70] sm:$0xff] %v179_v14 }
  0x1f   : > { %182 = vst [vmem:[%s737_s26 + $0x78] sm:$0xff] %v181_v15 }
  0x20   : > { %184 = vst [vmem:[%s737_s26 + $0x80] sm:$0xff] %v183_v16 }
  0x21   : > { %186 = vst [vmem:[%s737_s26 + $0x88] sm:$0xff] %v185_v17 }
  0x22   : > { %188 = vst [vmem:[%s737_s26 + $0x90] sm:$0xff] %v187_v18 }
  0x23   : > { %190 = vst [vmem:[%s737_s26 + $0x98] sm:$0xff] %v189_v19 }
  0x24   : > { %192 = vst [vmem:[%s737_s26 + $0xa0] sm:$0xff] %v191_v20 }
  0x25   : > { %194 = vst [vmem:[%s737_s26 + $0xa8] sm:$0xff] %v193_v21 }
  0x26   : > { %196 = vst [vmem:[%s737_s26 + $0xb0] sm:$0xff] %v195_v22 }
  0x27   : > { %198 = vst [vmem:[%s737_s26 + $0xb8] sm:$0xff] %v197_v23 }
  0x28   : > { %200 = vst [vmem:[%s737_s26 + $0xc0] sm:$0xff] %v199_v24 }
  0x29   : > { %202 = vst [vmem:[%s737_s26 + $0xc8] sm:$0xff] %v201_v25 }
  0x2a   : > { %204 = vst [vmem:[%s737_s26 + $0xd0] sm:$0xff] %v203_v26 }
  0x2b   : > { %206 = vst [vmem:[%s737_s26 + $0xd8] sm:$0xff] %v205_v27 }
  0x2c   : > { %208 = vst [vmem:[%s737_s26 + $0xe0] sm:$0xff] %v207_v28 }
  0x2d   : > { %210 = vst [vmem:[%s737_s26 + $0xe8] sm:$0xff] %v209_v29 }
  0x2e   : > { %212 = vst [vmem:[%s737_s26 + $0xf0] sm:$0xff] %v211_v30 }
  0x2f   : > { %214 = vst [vmem:[%s737_s26 + $0xf8] sm:$0xff] %v213_v31 }
  0x30 PF: > { %p613_p5 = scmp.ge.s32.totalorder %s676_s14, 1  ;;  %p219_p6 = scmp.lt.s32.totalorder %s676_s14, 3 }
  0x32   : > { %p220_p7 = pnand %p613_p5, %p219_p6 }
  0x33   : > { %s226_s25 = sand.u32 (!%p220_p7), 1, %s668_s12  }
  0x34   : > { %223 = sbr.rel (%p220_p7) target bundleno = 290 (0x122), region = 51  ;;  %s614_s12 = sshll.u32 (!%p220_p7), %s226_s25, 8 }
  0x35   : > { %s899_s29 = scalar_lea.vmem (!%p220_p7), [#allocation2], %s614_s12 }
  0x39   : > { %v335_v32 = vld [vmem:[%s1014_s1 + $0x178] sm:$0xff]  ;;  %v334_v33 = vld [vmem:[%s1014_s1 + $0x170] sm:$0xff]  ;;  %v333_v37 = vld [vmem:[%s1014_s1 + $0x168] sm:$0xff]  ;;  %vm338_vm0 = vcmask 130048  }
  0x3a   : > { %v303_v34 = vld [vmem:[%s1014_s1 + $0x78] sm:$0xff]  ;;  %445 = vmatpush.msra.mxu2 %v335_v32  ;;  %v302_v36 = vld [vmem:[%s1014_s1 + $0x70] sm:$0xff]  ;;  %v301_v39 = vld [vmem:[%s1014_s1 + $0x68] sm:$0xff] }
  0x3b   : > { %363 = vmatpush.msra.mxu0 %v303_v34  ;;  %v319_v35 = vld [vmem:[%s1014_s1 + $0xf8] sm:$0xff]  ;;  %v318_v38 = vld [vmem:[%s1014_s1 + $0xf0] sm:$0xff]  ;;  %v317_v40 = vld [vmem:[%s1014_s1 + $0xe8] sm:$0xff] }
  0x3c   : > { %404 = vmatpush.msra.mxu1 %v319_v35  ;;  %446 = vmatpush.msra.mxu2 %v334_v33  ;;  %v332_v41 = vld [vmem:[%s1014_s1 + $0x160] sm:$0xff]  ;;  %v331_v44 = vld [vmem:[%s1014_s1 + $0x158] sm:$0xff]  ;;  %v330_v47 = vld [vmem:[%s1014_s1 + $0x150] sm:$0xff] }
  0x3d   : > { %364 = vmatpush.msra.mxu0 %v302_v36  ;;  %v300_v42 = vld [vmem:[%s1014_s1 + $0x60] sm:$0xff]  ;;  %v299_v45 = vld [vmem:[%s1014_s1 + $0x58] sm:$0xff]  ;;  %v298_v48 = vld [vmem:[%s1014_s1 + $0x50] sm:$0xff] }
  0x3e   : > { %405 = vmatpush.msra.mxu1 %v318_v38  ;;  %447 = vmatpush.msra.mxu2 %v333_v37  ;;  %v316_v43 = vld [vmem:[%s1014_s1 + $0xe0] sm:$0xff]  ;;  %v315_v46 = vld [vmem:[%s1014_s1 + $0xd8] sm:$0xff]  ;;  %v314_v49 = vld [vmem:[%s1014_s1 + $0xd0] sm:$0xff] }
  0x3f   : > { %365 = vmatpush.msra.mxu0 %v301_v39  ;;  %v329_v50 = vld [vmem:[%s1014_s1 + $0x148] sm:$0xff]  ;;  %v328_v53 = vld [vmem:[%s1014_s1 + $0x140] sm:$0xff]  ;;  %v327_v56 = vld [vmem:[%s1014_s1 + $0x138] sm:$0xff] }
  0x40   : > { %406 = vmatpush.msra.mxu1 %v317_v40  ;;  %448 = vmatpush.msra.mxu2 %v332_v41  ;;  %v297_v51 = vld [vmem:[%s1014_s1 + $0x48] sm:$0xff]  ;;  %v296_v54 = vld [vmem:[%s1014_s1 + $0x40] sm:$0xff]  ;;  %v295_v57 = vld [vmem:[%s1014_s1 + $0x38] sm:$0xff] }
  0x41   : > { %366 = vmatpush.msra.mxu0 %v300_v42  ;;  %v313_v52 = vld [vmem:[%s1014_s1 + $0xc8] sm:$0xff]  ;;  %v312_v55 = vld [vmem:[%s1014_s1 + $0xc0] sm:$0xff]  ;;  %v311_v59 = vld [vmem:[%s1014_s1 + $0xb8] sm:$0xff] }
  0x42   : > { %407 = vmatpush.msra.mxu1 %v316_v43  ;;  %449 = vmatpush.msra.mxu2 %v331_v44  ;;  %v337_v58 = vld [vmem:[%s1014_s1 + $0x188] sm:$0xff]  ;;  %v326_v60 = vld [vmem:[%s1014_s1 + $0x130] sm:$0xff]  ;;  %v336_v62 = vld [vmem:[%s1014_s1 + $0x180] sm:$0xff] }
  0x43   : > { %367 = vmatpush.msra.mxu0 %v299_v45  ;;  %v294_v61 = vld [vmem:[%s1014_s1 + $0x30] sm:$0xff]  ;;  %500 = vmatpush.msra.mxu3 %v337_v58  ;;  %v259_v0 = vld [vmem:[%s899_s29 + $0x18] sm:$0xff]  ;;  %v325_v1 = vld [vmem:[%s1014_s1 + $0x128] sm:$0xff] }
  0x44   : > { %408 = vmatpush.msra.mxu1 %v315_v46  ;;  %450 = vmatpush.msra.mxu2 %v330_v47  ;;  %v310_v63 = vld [vmem:[%s1014_s1 + $0xb0] sm:$0xff]  ;;  %v293_v2 = vld [vmem:[%s1014_s1 + $0x28] sm:$0xff]  ;;  %v324_v4 = vld [vmem:[%s1014_s1 + $0x120] sm:$0xff] }
  0x45   : > { %368 = vmatpush.msra.mxu0 %v298_v48  ;;  %501 = vmatpush.msra.mxu3 %v336_v62  ;;  %v309_v3 = vld [vmem:[%s1014_s1 + $0xa8] sm:$0xff]  ;;  %v292_v5 = vld [vmem:[%s1014_s1 + $0x20] sm:$0xff]  ;;  %v323_v7 = vld [vmem:[%s1014_s1 + $0x118] sm:$0xff] }
  0x46   : > { %409 = vmatpush.msra.mxu1 %v314_v49  ;;  %451 = vmatpush.msra.mxu2 %v329_v50  ;;  %v308_v6 = vld [vmem:[%s1014_s1 + $0xa0] sm:$0xff]  ;;  %v291_v8 = vld [vmem:[%s1014_s1 + $0x18] sm:$0xff]  ;;  %v322_v10 = vld [vmem:[%s1014_s1 + $0x110] sm:$0xff] }
  0x47   : > { %369 = vmatpush.msra.mxu0 %v297_v51  ;;  %617 = vmatmul.msk.f32.vlgmr.msra.gmra.mxu3 %vm338_vm0, %v259_v0  ;;  %v307_v9 = vld [vmem:[%s1014_s1 + $0x98] sm:$0xff]  ;;  %v290_v11 = vld [vmem:[%s1014_s1 + $0x10] sm:$0xff]  ;;  %v321_v14 = vld [vmem:[%s1014_s1 + $0x108] sm:$0xff] }
  0x48   : > { %410 = vmatpush.msra.mxu1 %v313_v52  ;;  %452 = vmatpush.msra.mxu2 %v328_v53  ;;  %v306_v12 = vld [vmem:[%s1014_s1 + $0x90] sm:$0xff]  ;;  %v263_v13 = vld [vmem:[%s899_s29 + $0x38] sm:$0xff]  ;;  %v289_v15 = vld [vmem:[%s1014_s1 + $0x8] sm:$0xff] }
  0x49   : > { %370 = vmatpush.msra.mxu0 %v296_v54  ;;  %v305_v16 = vld [vmem:[%s1014_s1 + $0x88] sm:$0xff]  ;;  %v320_v17 = vld [vmem:[%s1014_s1 + $0x100] sm:$0xff]  ;;  %v258_v19 = vld [vmem:[%s899_s29 + $0x10] sm:$0xff] }
  0x4a   : > { %411 = vmatpush.msra.mxu1 %v312_v55  ;;  %453 = vmatpush.msra.mxu2 %v327_v56  ;;  %v288_v18 = vld [vmem:[%s1014_s1] sm:$0xff]  ;;  %v257_v22 = vld [vmem:[%s899_s29 + $0x8] sm:$0xff]  ;;  %v267_v23 = vld [vmem:[%s899_s29 + $0x58] sm:$0xff] }
  0x4b   : > { %371 = vmatpush.msra.mxu0 %v295_v57  ;;  %v304_v20 = vld [vmem:[%s1014_s1 + $0x80] sm:$0xff]  ;;  %v262_v24 = vld [vmem:[%s899_s29 + $0x30] sm:$0xff]  ;;  %v261_v26 = vld [vmem:[%s899_s29 + $0x28] sm:$0xff] }
  0x4c   : > { %412 = vmatpush.msra.mxu1 %v311_v59  ;;  %454 = vmatpush.msra.mxu2 %v326_v60  ;;  %v256_v21 = vld [vmem:[%s899_s29] sm:$0xff]  ;;  %v271_v27 = vld [vmem:[%s899_s29 + $0x78] sm:$0xff]  ;;  %v266_v28 = vld [vmem:[%s899_s29 + $0x50] sm:$0xff] }
  0x4d   : > { %372 = vmatpush.msra.mxu0 %v294_v61  ;;  %v260_v25 = vld [vmem:[%s899_s29 + $0x20] sm:$0xff]  ;;  %v265_v30 = vld [vmem:[%s899_s29 + $0x48] sm:$0xff]  ;;  %v275_v31 = vld [vmem:[%s899_s29 + $0x98] sm:$0xff] }
  0x4e   : > { %413 = vmatpush.msra.mxu1 %v310_v63  ;;  %455 = vmatpush.msra.mxu2 %v325_v1  ;;  %v264_v29 = vld [vmem:[%s899_s29 + $0x40] sm:$0xff]  ;;  %v270_v32 = vld [vmem:[%s899_s29 + $0x70] sm:$0xff]  ;;  %v269_v34 = vld [vmem:[%s899_s29 + $0x68] sm:$0xff] }
  0x4f   : > { %373 = vmatpush.msra.mxu0 %v293_v2  ;;  %618 = vmatmul.msk.f32.gmra.mxu3 %vm338_vm0, %v263_v13  ;;  %v268_v33 = vld [vmem:[%s899_s29 + $0x60] sm:$0xff]  ;;  %v279_v35 = vld [vmem:[%s899_s29 + $0xb8] sm:$0xff]  ;;  %v274_v36 = vld [vmem:[%s899_s29 + $0x90] sm:$0xff] }
  0x50   : > { %414 = vmatpush.msra.mxu1 %v309_v3  ;;  %456 = vmatpush.msra.mxu2 %v324_v4  ;;  %v272_v37 = vld [vmem:[%s899_s29 + $0x80] sm:$0xff]  ;;  %v273_v38 = vld [vmem:[%s899_s29 + $0x88] sm:$0xff]  ;;  %v283_v39 = vld [vmem:[%s899_s29 + $0xd8] sm:$0xff] }
  0x51   : > { %374 = vmatpush.msra.mxu0 %v292_v5  ;;  %v278_v40 = vld [vmem:[%s899_s29 + $0xb0] sm:$0xff]  ;;  %v276_v41 = vld [vmem:[%s899_s29 + $0xa0] sm:$0xff]  ;;  %v277_v42 = vld [vmem:[%s899_s29 + $0xa8] sm:$0xff] }
  0x52   : > { %415 = vmatpush.msra.mxu1 %v308_v6  ;;  %457 = vmatpush.msra.mxu2 %v323_v7  ;;  %v287_v43 = vld [vmem:[%s899_s29 + $0xf8] sm:$0xff]  ;;  %v282_v44 = vld [vmem:[%s899_s29 + $0xd0] sm:$0xff]  ;;  %v280_v45 = vld [vmem:[%s899_s29 + $0xc0] sm:$0xff] }
  0x53   : > { %375 = vmatpush.msra.mxu0 %v291_v8  ;;  %v281_v46 = vld [vmem:[%s899_s29 + $0xc8] sm:$0xff]  ;;  %v286_v47 = vld [vmem:[%s899_s29 + $0xf0] sm:$0xff]  ;;  %v284_v48 = vld [vmem:[%s899_s29 + $0xe0] sm:$0xff] }
  0x54   : > { %416 = vmatpush.msra.mxu1 %v307_v9  ;;  %458 = vmatpush.msra.mxu2 %v322_v10  ;;  %v285_v49 = vld [vmem:[%s899_s29 + $0xe8] sm:$0xff]  ;;  %s615_s29 = sshll.u32 %s605_s15, 1 }
  0x55   : > { %376 = vmatpush.msra.mxu0 %v290_v11  ;;  %p251_p8 = scmp.lt.s32.totalorder %s615_s29, 3 }
  0x56   : > { %417 = vmatpush.msra.mxu1 %v306_v12  ;;  %459 = vmatpush.msra.mxu2 %v321_v14 }
  0x57   : > { %377 = vmatpush.msra.mxu0 %v289_v15  ;;  %619 = vmatmul.msk.f32.gmra.mxu3 %vm338_vm0, %v267_v23  ;;  %s1021_s29 = smov (!%p251_p8, %s615_s29), 3 }
  0x58   : > { %418 = vmatpush.msra.mxu1 %v305_v16  ;;  %460 = vmatpush.msra.mxu2 %v320_v17  ;;  %s616_s23 = sshll.u32 %s1021_s29, 3 }
  0x59   : > { %378 = vmatpush.msra.mxu0 %v288_v18  ;;  %461 = vmatmul.f32.vlgmr.msra.gmra.mxu2 %v258_v19  ;;  %s254_s26 = scalar_lea.vmem %s1016_s3, %s616_s23 }
  0x5a   : > { %419 = vmatpush.msra.mxu1 %v304_v20  ;;  %379 = vmatmul.f32.vlgmr.msra.gmra.mxu0 %v256_v21 }
  0x5b   : > { %420 = vmatmul.f32.vlgmr.msra.gmra.mxu1 %v257_v22 }
  0x5f   : > { %620 = vmatmul.msk.f32.gmra.mxu3 %vm338_vm0, %v271_v27 }
  0x61   : > { %464 = vmatmul.f32.gmra.mxu2 %v262_v24 }
  0x62   : > { %382 = vmatmul.f32.gmra.mxu0 %v260_v25 }
  0x63   : > { %423 = vmatmul.f32.gmra.mxu1 %v261_v26 }
  0x67   : > { %621 = vmatmul.msk.f32.gmra.mxu3 %vm338_vm0, %v275_v31 }
  0x69   : > { %467 = vmatmul.f32.gmra.mxu2 %v266_v28 }
  0x6a   : > { %385 = vmatmul.f32.gmra.mxu0 %v264_v29 }
  0x6b   : > { %426 = vmatmul.f32.gmra.mxu1 %v265_v30 }
  0x6f   : > { %622 = vmatmul.msk.f32.gmra.mxu3 %vm338_vm0, %v279_v35 }
  0x71   : > { %470 = vmatmul.f32.gmra.mxu2 %v270_v32 }
  0x72   : > { %388 = vmatmul.f32.gmra.mxu0 %v268_v33 }
  0x73   : > { %429 = vmatmul.f32.gmra.mxu1 %v269_v34  ;;  %v653_v34 = vld [vmem:[%s1015_s2] ss:$0 sm:$0xff] }
  0x77   : > { %623 = vmatmul.msk.f32.gmra.mxu3 %vm338_vm0, %v283_v39 }
  0x79   : > { %473 = vmatmul.f32.gmra.mxu2 %v274_v36 }
  0x7a   : > { %391 = vmatmul.f32.gmra.mxu0 %v272_v37 }
  0x7b   : > { %432 = vmatmul.f32.gmra.mxu1 %v273_v38 }
  0x7f   : > { %624 = vmatmul.msk.f32.gmra.mxu3 %vm338_vm0, %v287_v43 }
  0x81   : > { %476 = vmatmul.f32.gmra.mxu2 %v278_v40 }
  0x82   : > { %394 = vmatmul.f32.gmra.mxu0 %v276_v41 }
  0x83   : > { %435 = vmatmul.f32.gmra.mxu1 %v277_v42 }
  0x89   : > { %479 = vmatmul.f32.gmra.mxu2 %v282_v44 }
  0x8a   : > { %397 = vmatmul.f32.gmra.mxu0 %v280_v45 }
  0x8b   : > { %438 = vmatmul.f32.gmra.mxu1 %v281_v46 }
  0x91   : > { %482 = vmatmul.f32.gmra.mxu2 %v286_v47 }
  0x92   : > { %400 = vmatmul.f32.gmra.mxu0 %v284_v48 }
  0x93   : > { %441 = vmatmul.f32.gmra.mxu1 %v285_v49 }
  0xca   : > { %v503_v50 = vpop.f32.mrf.mxu3 }
  0xd2   : > { %v506_v53 = vpop.f32.mrf.mxu3 }
  0xd7   : > { %v380_v51 = vpop.f32.mrf.mxu0 }
  0xd8   : > { %v421_v52 = vpop.f32.mrf.mxu1 }
  0xd9   : > { %v422_v11 = vadd.f32 %v421_v52, %v380_v51 }
  0xda   : > { %v509_v57 = vpop.f32.mrf.mxu3 }
  0xdc   : > { %v462_v54 = vpop.f32.mrf.mxu2 }
  0xdd   : > { %v463_v17 = vadd.f32 %v462_v54, %v422_v11 }
  0xdf   : > { %v383_v55 = vpop.f32.mrf.mxu0  ;;  %v504_v24 = vadd.f32 %v503_v50, %v463_v17 }
  0xe0   : > { %v424_v56 = vpop.f32.mrf.mxu1 }
  0xe1   : > { %v425_v25 = vadd.f32 %v424_v56, %v383_v55 }
  0xe2   : > { %v512_v62 = vpop.f32.mrf.mxu3 }
  0xe4   : > { %v465_v58 = vpop.f32.mrf.mxu2 }
  0xe5   : > { %v466_v36 = vadd.f32 %v465_v58, %v425_v25 }
  0xe7   : > { %v386_v59 = vpop.f32.mrf.mxu0  ;;  %v507_v44 = vadd.f32 %v506_v53, %v466_v36 }
  0xe8   : > { %v427_v60 = vpop.f32.mrf.mxu1 }
  0xe9   : > { %v428_v12 = vadd.f32 %v427_v60, %v386_v59 }
  0xea   : > { %v515_v2 = vpop.f32.mrf.mxu3 }
  0xec   : > { %v468_v61 = vpop.f32.mrf.mxu2 }
  0xed   : > { %v469_v19 = vadd.f32 %v468_v61, %v428_v12 }
  0xef   : > { %v389_v63 = vpop.f32.mrf.mxu0  ;;  %v510_v26 = vadd.f32 %v509_v57, %v469_v19 }
  0xf0   : > { %v430_v0 = vpop.f32.mrf.mxu1 }
  0xf1   : > { %v431_v27 = vadd.f32 %v430_v0, %v389_v63 }
  0xf2   : > { %v518_v8 = vpop.f32.mrf.mxu3 }
  0xf4   : > { %v471_v1 = vpop.f32.mrf.mxu2 }
  0xf5   : > { %v472_v37 = vadd.f32 %v471_v1, %v431_v27 }
  0xf7   : > { %v392_v3 = vpop.f32.mrf.mxu0  ;;  %v513_v45 = vadd.f32 %v512_v62, %v472_v37 }
  0xf8   : > { %v433_v4 = vpop.f32.mrf.mxu1 }
  0xf9   : > { %v434_v10 = vadd.f32 %v433_v4, %v392_v3 }
  0xfa   : > { %v521_v18 = vpop.f32.mrf.mxu3 }
  0xfc   : > { %v474_v5 = vpop.f32.mrf.mxu2 }
  0xfd   : > { %v475_v15 = vadd.f32 %v474_v5, %v434_v10 }
  0xff   : > { %v395_v6 = vpop.f32.mrf.mxu0  ;;  %v516_v21 = vadd.f32 %v515_v2, %v475_v15 }
 0x100   : > { %v436_v7 = vpop.f32.mrf.mxu1 }
 0x101   : > { %v437_v22 = vadd.f32 %v436_v7, %v395_v6  ;;  %v527_v31 = vmax.f32 %v504_v24, %v516_v21 }
 0x102   : > { %v524_v40 = vpop.f32.mrf.mxu3 }
 0x104   : > { %v477_v9 = vpop.f32.mrf.mxu2 }
 0x105   : > { %v478_v32 = vadd.f32 %v477_v9, %v437_v22 }
 0x107   : > { %v398_v13 = vpop.f32.mrf.mxu0  ;;  %v519_v41 = vadd.f32 %v518_v8, %v478_v32 }
 0x108   : > { %v439_v14 = vpop.f32.mrf.mxu1 }
 0x109   : > { %v440_v16 = vadd.f32 %v439_v14, %v398_v13  ;;  %v530_v48 = vmax.f32 %v507_v44, %v519_v41 }
 0x10c   : > { %v480_v20 = vpop.f32.mrf.mxu2 }
 0x10d   : > { %v481_v23 = vadd.f32 %v480_v20, %v440_v16 }
 0x10f   : > { %v522_v28 = vadd.f32 %v521_v18, %v481_v23  ;;  %v401_v29 = vpop.f32.mrf.mxu0 }
 0x110   : > { %v442_v30 = vpop.f32.mrf.mxu1 }
 0x111   : > { %v528_v33 = vmax.f32 %v510_v26, %v522_v28  ;;  %v443_v35 = vadd.f32 %v442_v30, %v401_v29 }
 0x113   : > { %v529_v38 = vmax.f32 %v527_v31, %v528_v33 }
 0x114   : > { %v483_v39 = vpop.f32.mrf.mxu2 }
 0x115   : > { %v537_v42 = vadd.f32 %v653_v34, %v529_v38  ;;  %v484_v43 = vadd.f32 %v483_v39, %v443_v35 }
 0x117   : > { %v539_v46 = vmax.f32 %v537_v42, 0.0  ;;  %v525_v47 = vadd.f32 %v524_v40, %v484_v43 }
 0x119   : > { %541 = vst [vmem:[%s254_s26] sm:$0xff] %v539_v46  ;;  %v531_v49 = vmax.f32 %v513_v45, %v525_v47 }
 0x11b   : > { %v532_v50 = vmax.f32 %v530_v48, %v531_v49 }
 0x11d   : > { %v538_v51 = vadd.f32 %v653_v34, %v532_v50 }
 0x11f   : > { %v540_v52 = vmax.f32 %v538_v51, 0.0 }
 0x121   : > { %542 = vst [vmem:[%s254_s26 + $0x8] sm:$0xff] %v540_v52 }
 0x122 PF: > { %p10_p9 = scmp.ge.s32.totalorder %s715_s16, 4   ;;  %s1017_s12 = smov %s672_s13 }
 0x123   : > { %s1018_s13 = smov %s724_s19  ;;  %s1019_s14 = smov %s715_s16 }
 0x124   :  { %12 = sbr.rel (!%p10_p9) target bundleno = 2 (0x2), region = 90 }

// kernel: forward.5
= control target key start
LH: loop header
LB: loop body
LE: loop exit
PB: predicated region body
PF: predicated region fallthrough
CT: control target
= control target key end

     0   :  { %s1356_s0 = inlined_call_operand.vmem [shape: f32[8,1600], index: 0, kind: input, shape index: {}]   ;;  %s1357_s1 = inlined_call_operand.vmem [shape: f32[1600,8], index: 1, kind: input, shape index: {}]   ;;  %s1358_s2 = inlined_call_operand.vmem [shape: f32[1,8], index: 2, kind: input, shape index: {}]   ;;  %s1359_s3 = inlined_call_operand.vmem [shape: f32[4,8,128], index: 3, kind: input, shape index: {}]   ;;  %s1360_s4 = inlined_call_operand.vmem [shape: f32[1,128], index: 4, kind: input, shape index: {}]   ;;  %s1361_s5 = inlined_call_operand.hbm [shape: f32[2,128], index: 5, kind: output, shape index: {}]  }
   0x1   :  { %v49_v0 = vld [vmem:[%s1357_s1 + $0x78] sm:$0xff]  ;;  %v48_v2 = vld [vmem:[%s1357_s1 + $0x70] sm:$0xff]  ;;  %v47_v6 = vld [vmem:[%s1357_s1 + $0x68] sm:$0xff] }
   0x2   :  { %v81_v1 = vld [vmem:[%s1357_s1 + $0x178] sm:$0xff]  ;;  %242 = vmatpush.msra.mxu0 %v49_v0  ;;  %v80_v4 = vld [vmem:[%s1357_s1 + $0x170] sm:$0xff]  ;;  %v79_v8 = vld [vmem:[%s1357_s1 + $0x168] sm:$0xff] }
   0x3   :  { %282 = vmatpush.msra.mxu2 %v81_v1  ;;  %v65_v3 = vld [vmem:[%s1357_s1 + $0xf8] sm:$0xff]  ;;  %v64_v7 = vld [vmem:[%s1357_s1 + $0xf0] sm:$0xff]  ;;  %v63_v10 = vld [vmem:[%s1357_s1 + $0xe8] sm:$0xff] }
   0x4   :  { %v97_v5 = vld [vmem:[%s1357_s1 + $0x1f8] sm:$0xff]  ;;  %262 = vmatpush.msra.mxu1 %v65_v3  ;;  %243 = vmatpush.msra.mxu0 %v48_v2  ;;  %v96_v9 = vld [vmem:[%s1357_s1 + $0x1f0] sm:$0xff]  ;;  %v46_v11 = vld [vmem:[%s1357_s1 + $0x60] sm:$0xff] }
   0x5   :  { %302 = vmatpush.msra.mxu3 %v97_v5  ;;  %283 = vmatpush.msra.mxu2 %v80_v4  ;;  %v78_v12 = vld [vmem:[%s1357_s1 + $0x160] sm:$0xff]  ;;  %v95_v13 = vld [vmem:[%s1357_s1 + $0x1e8] sm:$0xff]  ;;  %v45_v16 = vld [vmem:[%s1357_s1 + $0x58] sm:$0xff] }
   0x6   :  { %263 = vmatpush.msra.mxu1 %v64_v7  ;;  %244 = vmatpush.msra.mxu0 %v47_v6  ;;  %v62_v14 = vld [vmem:[%s1357_s1 + $0xe0] sm:$0xff]  ;;  %v77_v17 = vld [vmem:[%s1357_s1 + $0x158] sm:$0xff]  ;;  %v44_v20 = vld [vmem:[%s1357_s1 + $0x50] sm:$0xff] }
   0x7   :  { %303 = vmatpush.msra.mxu3 %v96_v9  ;;  %284 = vmatpush.msra.mxu2 %v79_v8  ;;  %v94_v15 = vld [vmem:[%s1357_s1 + $0x1e0] sm:$0xff]  ;;  %v61_v18 = vld [vmem:[%s1357_s1 + $0xd8] sm:$0xff]  ;;  %v76_v21 = vld [vmem:[%s1357_s1 + $0x150] sm:$0xff] }
   0x8   :  { %264 = vmatpush.msra.mxu1 %v63_v10  ;;  %245 = vmatpush.msra.mxu0 %v46_v11  ;;  %v93_v19 = vld [vmem:[%s1357_s1 + $0x1d8] sm:$0xff]  ;;  %v60_v22 = vld [vmem:[%s1357_s1 + $0xd0] sm:$0xff]  ;;  %v43_v24 = vld [vmem:[%s1357_s1 + $0x48] sm:$0xff] }
   0x9   :  { %304 = vmatpush.msra.mxu3 %v95_v13  ;;  %285 = vmatpush.msra.mxu2 %v78_v12  ;;  %v92_v23 = vld [vmem:[%s1357_s1 + $0x1d0] sm:$0xff]  ;;  %v75_v25 = vld [vmem:[%s1357_s1 + $0x148] sm:$0xff]  ;;  %v42_v28 = vld [vmem:[%s1357_s1 + $0x40] sm:$0xff] }
   0xa   :  { %265 = vmatpush.msra.mxu1 %v62_v14  ;;  %246 = vmatpush.msra.mxu0 %v45_v16  ;;  %v59_v26 = vld [vmem:[%s1357_s1 + $0xc8] sm:$0xff]  ;;  %v74_v29 = vld [vmem:[%s1357_s1 + $0x140] sm:$0xff]  ;;  %v41_v32 = vld [vmem:[%s1357_s1 + $0x38] sm:$0xff] }
   0xb   :  { %305 = vmatpush.msra.mxu3 %v94_v15  ;;  %286 = vmatpush.msra.mxu2 %v77_v17  ;;  %v91_v27 = vld [vmem:[%s1357_s1 + $0x1c8] sm:$0xff]  ;;  %v58_v30 = vld [vmem:[%s1357_s1 + $0xc0] sm:$0xff]  ;;  %v73_v33 = vld [vmem:[%s1357_s1 + $0x138] sm:$0xff] }
   0xc   :  { %266 = vmatpush.msra.mxu1 %v61_v18  ;;  %247 = vmatpush.msra.mxu0 %v44_v20  ;;  %v90_v31 = vld [vmem:[%s1357_s1 + $0x1c0] sm:$0xff]  ;;  %v57_v34 = vld [vmem:[%s1357_s1 + $0xb8] sm:$0xff]  ;;  %v40_v36 = vld [vmem:[%s1357_s1 + $0x30] sm:$0xff] }
   0xd   :  { %306 = vmatpush.msra.mxu3 %v93_v19  ;;  %287 = vmatpush.msra.mxu2 %v76_v21  ;;  %v89_v35 = vld [vmem:[%s1357_s1 + $0x1b8] sm:$0xff]  ;;  %v72_v37 = vld [vmem:[%s1357_s1 + $0x130] sm:$0xff]  ;;  %v39_v40 = vld [vmem:[%s1357_s1 + $0x28] sm:$0xff] }
   0xe   :  { %267 = vmatpush.msra.mxu1 %v60_v22  ;;  %248 = vmatpush.msra.mxu0 %v43_v24  ;;  %v56_v38 = vld [vmem:[%s1357_s1 + $0xb0] sm:$0xff]  ;;  %v71_v41 = vld [vmem:[%s1357_s1 + $0x128] sm:$0xff]  ;;  %v38_v44 = vld [vmem:[%s1357_s1 + $0x20] sm:$0xff] }
   0xf   :  { %307 = vmatpush.msra.mxu3 %v92_v23  ;;  %288 = vmatpush.msra.mxu2 %v75_v25  ;;  %v88_v39 = vld [vmem:[%s1357_s1 + $0x1b0] sm:$0xff]  ;;  %v55_v42 = vld [vmem:[%s1357_s1 + $0xa8] sm:$0xff]  ;;  %v70_v45 = vld [vmem:[%s1357_s1 + $0x120] sm:$0xff] }
  0x10   :  { %268 = vmatpush.msra.mxu1 %v59_v26  ;;  %249 = vmatpush.msra.mxu0 %v42_v28  ;;  %v87_v43 = vld [vmem:[%s1357_s1 + $0x1a8] sm:$0xff]  ;;  %v54_v46 = vld [vmem:[%s1357_s1 + $0xa0] sm:$0xff]  ;;  %v37_v48 = vld [vmem:[%s1357_s1 + $0x18] sm:$0xff] }
  0x11   :  { %308 = vmatpush.msra.mxu3 %v91_v27  ;;  %289 = vmatpush.msra.mxu2 %v74_v29  ;;  %v86_v47 = vld [vmem:[%s1357_s1 + $0x1a0] sm:$0xff]  ;;  %v69_v49 = vld [vmem:[%s1357_s1 + $0x118] sm:$0xff]  ;;  %v36_v52 = vld [vmem:[%s1357_s1 + $0x10] sm:$0xff] }
  0x12   :  { %269 = vmatpush.msra.mxu1 %v58_v30  ;;  %250 = vmatpush.msra.mxu0 %v41_v32  ;;  %v53_v50 = vld [vmem:[%s1357_s1 + $0x98] sm:$0xff]  ;;  %v68_v53 = vld [vmem:[%s1357_s1 + $0x110] sm:$0xff]  ;;  %v35_v56 = vld [vmem:[%s1357_s1 + $0x8] sm:$0xff] }
  0x13   :  { %309 = vmatpush.msra.mxu3 %v90_v31  ;;  %290 = vmatpush.msra.mxu2 %v73_v33  ;;  %v85_v51 = vld [vmem:[%s1357_s1 + $0x198] sm:$0xff]  ;;  %v52_v54 = vld [vmem:[%s1357_s1 + $0x90] sm:$0xff]  ;;  %v67_v57 = vld [vmem:[%s1357_s1 + $0x108] sm:$0xff] }
  0x14   :  { %270 = vmatpush.msra.mxu1 %v57_v34  ;;  %251 = vmatpush.msra.mxu0 %v40_v36  ;;  %v84_v55 = vld [vmem:[%s1357_s1 + $0x190] sm:$0xff]  ;;  %v51_v58 = vld [vmem:[%s1357_s1 + $0x88] sm:$0xff]  ;;  %v34_v60 = vld [vmem:[%s1357_s1] sm:$0xff] }
  0x15   :  { %310 = vmatpush.msra.mxu3 %v89_v35  ;;  %291 = vmatpush.msra.mxu2 %v72_v37  ;;  %v83_v59 = vld [vmem:[%s1357_s1 + $0x188] sm:$0xff]  ;;  %v66_v61 = vld [vmem:[%s1357_s1 + $0x100] sm:$0xff]  ;;  %v113_v62 = vld [vmem:[%s1357_s1 + $0x278] sm:$0xff] }
  0x16   :  { %271 = vmatpush.msra.mxu1 %v56_v38  ;;  %252 = vmatpush.msra.mxu0 %v39_v40  ;;  %v145_v63 = vld [vmem:[%s1357_s1 + $0x378] sm:$0xff]  ;;  %v50_v0 = vld [vmem:[%s1357_s1 + $0x80] sm:$0xff]  ;;  %v112_v2 = vld [vmem:[%s1357_s1 + $0x270] sm:$0xff] }
  0x17   :  { %311 = vmatpush.msra.mxu3 %v88_v39  ;;  %292 = vmatpush.msra.mxu2 %v71_v41  ;;  %v82_v1 = vld [vmem:[%s1357_s1 + $0x180] sm:$0xff]  ;;  %v129_v3 = vld [vmem:[%s1357_s1 + $0x2f8] sm:$0xff]  ;;  %v144_v4 = vld [vmem:[%s1357_s1 + $0x370] sm:$0xff] }
  0x18   :  { %272 = vmatpush.msra.mxu1 %v55_v42  ;;  %253 = vmatpush.msra.mxu0 %v38_v44  ;;  %v161_v5 = vld [vmem:[%s1357_s1 + $0x3f8] sm:$0xff]  ;;  %v111_v6 = vld [vmem:[%s1357_s1 + $0x268] sm:$0xff]  ;;  %v128_v7 = vld [vmem:[%s1357_s1 + $0x2f0] sm:$0xff] }
  0x19   :  { %312 = vmatpush.msra.mxu3 %v87_v43  ;;  %293 = vmatpush.msra.mxu2 %v70_v45  ;;  %v143_v8 = vld [vmem:[%s1357_s1 + $0x368] sm:$0xff]  ;;  %v160_v9 = vld [vmem:[%s1357_s1 + $0x3f0] sm:$0xff]  ;;  %v110_v10 = vld [vmem:[%s1357_s1 + $0x260] sm:$0xff] }
  0x1a   :  { %273 = vmatpush.msra.mxu1 %v54_v46  ;;  %254 = vmatpush.msra.mxu0 %v37_v48  ;;  %v127_v11 = vld [vmem:[%s1357_s1 + $0x2e8] sm:$0xff]  ;;  %v142_v12 = vld [vmem:[%s1357_s1 + $0x360] sm:$0xff]  ;;  %v109_v14 = vld [vmem:[%s1357_s1 + $0x258] sm:$0xff] }
  0x1b   :  { %313 = vmatpush.msra.mxu3 %v86_v47  ;;  %294 = vmatpush.msra.mxu2 %v69_v49  ;;  %v159_v13 = vld [vmem:[%s1357_s1 + $0x3e8] sm:$0xff]  ;;  %v126_v15 = vld [vmem:[%s1357_s1 + $0x2e0] sm:$0xff]  ;;  %v141_v16 = vld [vmem:[%s1357_s1 + $0x358] sm:$0xff] }
  0x1c   :  { %274 = vmatpush.msra.mxu1 %v53_v50  ;;  %255 = vmatpush.msra.mxu0 %v36_v52  ;;  %v158_v17 = vld [vmem:[%s1357_s1 + $0x3e0] sm:$0xff]  ;;  %v108_v18 = vld [vmem:[%s1357_s1 + $0x250] sm:$0xff]  ;;  %v125_v19 = vld [vmem:[%s1357_s1 + $0x2d8] sm:$0xff] }
  0x1d   :  { %314 = vmatpush.msra.mxu3 %v85_v51  ;;  %295 = vmatpush.msra.mxu2 %v68_v53  ;;  %v140_v20 = vld [vmem:[%s1357_s1 + $0x350] sm:$0xff]  ;;  %v157_v21 = vld [vmem:[%s1357_s1 + $0x3d8] sm:$0xff]  ;;  %v107_v22 = vld [vmem:[%s1357_s1 + $0x248] sm:$0xff] }
  0x1e   :  { %275 = vmatpush.msra.mxu1 %v52_v54  ;;  %256 = vmatpush.msra.mxu0 %v35_v56  ;;  %v124_v23 = vld [vmem:[%s1357_s1 + $0x2d0] sm:$0xff]  ;;  %v139_v24 = vld [vmem:[%s1357_s1 + $0x348] sm:$0xff]  ;;  %v106_v26 = vld [vmem:[%s1357_s1 + $0x240] sm:$0xff] }
  0x1f   :  { %315 = vmatpush.msra.mxu3 %v84_v55  ;;  %296 = vmatpush.msra.mxu2 %v67_v57  ;;  %v156_v25 = vld [vmem:[%s1357_s1 + $0x3d0] sm:$0xff]  ;;  %v123_v27 = vld [vmem:[%s1357_s1 + $0x2c8] sm:$0xff]  ;;  %v138_v28 = vld [vmem:[%s1357_s1 + $0x340] sm:$0xff] }
  0x20   :  { %276 = vmatpush.msra.mxu1 %v51_v58  ;;  %257 = vmatpush.msra.mxu0 %v34_v60  ;;  %v155_v29 = vld [vmem:[%s1357_s1 + $0x3c8] sm:$0xff]  ;;  %v105_v30 = vld [vmem:[%s1357_s1 + $0x238] sm:$0xff]  ;;  %v122_v31 = vld [vmem:[%s1357_s1 + $0x2c0] sm:$0xff] }
  0x21   :  { %316 = vmatpush.msra.mxu3 %v83_v59  ;;  %297 = vmatpush.msra.mxu2 %v66_v61  ;;  %v137_v32 = vld [vmem:[%s1357_s1 + $0x338] sm:$0xff]  ;;  %v154_v33 = vld [vmem:[%s1357_s1 + $0x3c0] sm:$0xff]  ;;  %v104_v34 = vld [vmem:[%s1357_s1 + $0x230] sm:$0xff] }
  0x22   :  { %322 = vmatpush.msrb.mxu0 %v113_v62  ;;  %277 = vmatpush.msra.mxu1 %v50_v0  ;;  %v121_v35 = vld [vmem:[%s1357_s1 + $0x2b8] sm:$0xff]  ;;  %v136_v36 = vld [vmem:[%s1357_s1 + $0x330] sm:$0xff]  ;;  %v103_v38 = vld [vmem:[%s1357_s1 + $0x228] sm:$0xff] }
  0x23   :  { %362 = vmatpush.msrb.mxu2 %v145_v63  ;;  %317 = vmatpush.msra.mxu3 %v82_v1  ;;  %v153_v37 = vld [vmem:[%s1357_s1 + $0x3b8] sm:$0xff]  ;;  %v120_v39 = vld [vmem:[%s1357_s1 + $0x2b0] sm:$0xff]  ;;  %v135_v40 = vld [vmem:[%s1357_s1 + $0x328] sm:$0xff] }
  0x24   :  { %323 = vmatpush.msrb.mxu0 %v112_v2  ;;  %342 = vmatpush.msrb.mxu1 %v129_v3  ;;  %v152_v41 = vld [vmem:[%s1357_s1 + $0x3b0] sm:$0xff]  ;;  %v102_v42 = vld [vmem:[%s1357_s1 + $0x220] sm:$0xff]  ;;  %v119_v43 = vld [vmem:[%s1357_s1 + $0x2a8] sm:$0xff] }
  0x25   :  { %363 = vmatpush.msrb.mxu2 %v144_v4  ;;  %382 = vmatpush.msrb.mxu3 %v161_v5  ;;  %v134_v44 = vld [vmem:[%s1357_s1 + $0x320] sm:$0xff]  ;;  %v151_v45 = vld [vmem:[%s1357_s1 + $0x3a8] sm:$0xff]  ;;  %v101_v46 = vld [vmem:[%s1357_s1 + $0x218] sm:$0xff] }
  0x26   :  { %324 = vmatpush.msrb.mxu0 %v111_v6  ;;  %343 = vmatpush.msrb.mxu1 %v128_v7  ;;  %v118_v47 = vld [vmem:[%s1357_s1 + $0x2a0] sm:$0xff]  ;;  %v133_v48 = vld [vmem:[%s1357_s1 + $0x318] sm:$0xff]  ;;  %v100_v50 = vld [vmem:[%s1357_s1 + $0x210] sm:$0xff] }
  0x27   :  { %364 = vmatpush.msrb.mxu2 %v143_v8  ;;  %383 = vmatpush.msrb.mxu3 %v160_v9  ;;  %v150_v49 = vld [vmem:[%s1357_s1 + $0x3a0] sm:$0xff]  ;;  %v117_v51 = vld [vmem:[%s1357_s1 + $0x298] sm:$0xff]  ;;  %v132_v52 = vld [vmem:[%s1357_s1 + $0x310] sm:$0xff] }
  0x28   :  { %325 = vmatpush.msrb.mxu0 %v110_v10  ;;  %344 = vmatpush.msrb.mxu1 %v127_v11  ;;  %v149_v53 = vld [vmem:[%s1357_s1 + $0x398] sm:$0xff]  ;;  %v99_v54 = vld [vmem:[%s1357_s1 + $0x208] sm:$0xff]  ;;  %v116_v55 = vld [vmem:[%s1357_s1 + $0x290] sm:$0xff] }
  0x29   :  { %365 = vmatpush.msrb.mxu2 %v142_v12  ;;  %384 = vmatpush.msrb.mxu3 %v159_v13  ;;  %v131_v56 = vld [vmem:[%s1357_s1 + $0x308] sm:$0xff]  ;;  %v148_v57 = vld [vmem:[%s1357_s1 + $0x390] sm:$0xff]  ;;  %v98_v59 = vld [vmem:[%s1357_s1 + $0x200] sm:$0xff] }
  0x2a   :  { %326 = vmatpush.msrb.mxu0 %v109_v14  ;;  %345 = vmatpush.msrb.mxu1 %v126_v15  ;;  %v23_v58 = vld [vmem:[%s1356_s0 + $0x10] sm:$0xff]  ;;  %v115_v60 = vld [vmem:[%s1357_s1 + $0x288] sm:$0xff]  ;;  %v130_v61 = vld [vmem:[%s1357_s1 + $0x300] sm:$0xff] }
  0x2b   :  { %366 = vmatpush.msrb.mxu2 %v141_v16  ;;  %385 = vmatpush.msrb.mxu3 %v158_v17  ;;  %v147_v62 = vld [vmem:[%s1357_s1 + $0x388] sm:$0xff]  ;;  %v21_v63 = vld [vmem:[%s1356_s0] sm:$0xff]  ;;  %v24_v0 = vld [vmem:[%s1356_s0 + $0x18] sm:$0xff] }
  0x2c   :  { %327 = vmatpush.msrb.mxu0 %v108_v18  ;;  %346 = vmatpush.msrb.mxu1 %v125_v19  ;;  %v177_v1 = vld [vmem:[%s1357_s1 + $0x478] sm:$0xff]  ;;  %v114_v3 = vld [vmem:[%s1357_s1 + $0x280] sm:$0xff]  ;;  %v22_v5 = vld [vmem:[%s1356_s0 + $0x8] sm:$0xff] }
  0x2d   :  { %367 = vmatpush.msrb.mxu2 %v140_v20  ;;  %386 = vmatpush.msrb.mxu3 %v157_v21  ;;  %v209_v2 = vld [vmem:[%s1357_s1 + $0x578] sm:$0xff]  ;;  %v146_v4 = vld [vmem:[%s1357_s1 + $0x380] sm:$0xff]  ;;  %v176_v6 = vld [vmem:[%s1357_s1 + $0x470] sm:$0xff] }
  0x2e   :  { %328 = vmatpush.msrb.mxu0 %v107_v22  ;;  %347 = vmatpush.msrb.mxu1 %v124_v23  ;;  %v193_v7 = vld [vmem:[%s1357_s1 + $0x4f8] sm:$0xff] }
  0x2f   :  { %368 = vmatpush.msrb.mxu2 %v139_v24  ;;  %387 = vmatpush.msrb.mxu3 %v156_v25 }
  0x30   :  { %329 = vmatpush.msrb.mxu0 %v106_v26  ;;  %348 = vmatpush.msrb.mxu1 %v123_v27 }
  0x31   :  { %369 = vmatpush.msrb.mxu2 %v138_v28  ;;  %388 = vmatpush.msrb.mxu3 %v155_v29 }
  0x32   :  { %330 = vmatpush.msrb.mxu0 %v105_v30  ;;  %349 = vmatpush.msrb.mxu1 %v122_v31 }
  0x33   :  { %370 = vmatpush.msrb.mxu2 %v137_v32  ;;  %389 = vmatpush.msrb.mxu3 %v154_v33 }
  0x34   :  { %331 = vmatpush.msrb.mxu0 %v104_v34  ;;  %350 = vmatpush.msrb.mxu1 %v121_v35 }
  0x35   :  { %371 = vmatpush.msrb.mxu2 %v136_v36  ;;  %390 = vmatpush.msrb.mxu3 %v153_v37 }
  0x36   :  { %332 = vmatpush.msrb.mxu0 %v103_v38  ;;  %351 = vmatpush.msrb.mxu1 %v120_v39 }
  0x37   :  { %372 = vmatpush.msrb.mxu2 %v135_v40  ;;  %391 = vmatpush.msrb.mxu3 %v152_v41 }
  0x38   :  { %333 = vmatpush.msrb.mxu0 %v102_v42  ;;  %352 = vmatpush.msrb.mxu1 %v119_v43 }
  0x39   :  { %373 = vmatpush.msrb.mxu2 %v134_v44  ;;  %392 = vmatpush.msrb.mxu3 %v151_v45 }
  0x3a   :  { %334 = vmatpush.msrb.mxu0 %v101_v46  ;;  %353 = vmatpush.msrb.mxu1 %v118_v47 }
  0x3b   :  { %374 = vmatpush.msrb.mxu2 %v133_v48  ;;  %393 = vmatpush.msrb.mxu3 %v150_v49 }
  0x3c   :  { %335 = vmatpush.msrb.mxu0 %v100_v50  ;;  %354 = vmatpush.msrb.mxu1 %v117_v51 }
  0x3d   :  { %375 = vmatpush.msrb.mxu2 %v132_v52  ;;  %394 = vmatpush.msrb.mxu3 %v149_v53 }
  0x3e   :  { %336 = vmatpush.msrb.mxu0 %v99_v54  ;;  %355 = vmatpush.msrb.mxu1 %v116_v55 }
  0x3f   :  { %376 = vmatpush.msrb.mxu2 %v131_v56  ;;  %395 = vmatpush.msrb.mxu3 %v148_v57 }
  0x40   :  { %298 = vmatmul.f32.vlgmr.msra.gmra.mxu2 %v23_v58  ;;  %337 = vmatpush.msrb.mxu0 %v98_v59 }
  0x41   :  { %356 = vmatpush.msrb.mxu1 %v115_v60  ;;  %377 = vmatpush.msrb.mxu2 %v130_v61 }
  0x42   :  { %396 = vmatpush.msrb.mxu3 %v147_v62  ;;  %258 = vmatmul.f32.vlgmr.msra.gmra.mxu0 %v21_v63 }
  0x43   :  { %318 = vmatmul.f32.vlgmr.msra.gmra.mxu3 %v24_v0  ;;  %402 = vmatpush.msra.mxu0 %v177_v1 }
  0x44   :  { %10 = vsyncpa [#allocation3], 0  ;;  %442 = vmatpush.msra.mxu2 %v209_v2  ;;  %357 = vmatpush.msrb.mxu1 %v114_v3  ;;  %v208_v8 = vld [vmem:[%s1357_s1 + $0x570] sm:$0xff]  ;;  %v225_v9 = vld [vmem:[%s1357_s1 + $0x5f8] sm:$0xff]  ;;  %vm238_vm0 = vcmask 523264   ;;  %vm505_vm1 = vcmask 64512  }
  0x45   :  { %397 = vmatpush.msrb.mxu3 %v146_v4  ;;  %278 = vmatmul.f32.vlgmr.msra.gmra.mxu1 %v22_v5  ;;  %v175_v10 = vld [vmem:[%s1357_s1 + $0x468] sm:$0xff]  ;;  %v192_v11 = vld [vmem:[%s1357_s1 + $0x4f0] sm:$0xff]  ;;  %v174_v15 = vld [vmem:[%s1357_s1 + $0x460] sm:$0xff]  ;;  %s665_s27 = smov [#allocation2]   ;;  %s619_s6 = sshll.u32 %s1361_s5, 4  ;;  %s620_s6 = int_to_ptr.hbm [resolvable:$true] %s619_s6 }
  0x46   :  { %403 = vmatpush.msra.mxu0 %v176_v6  ;;  %422 = vmatpush.msra.mxu1 %v193_v7  ;;  %v207_v12 = vld [vmem:[%s1357_s1 + $0x568] sm:$0xff]  ;;  %v224_v13 = vld [vmem:[%s1357_s1 + $0x5f0] sm:$0xff]  ;;  %v206_v17 = vld [vmem:[%s1357_s1 + $0x560] sm:$0xff]  ;;  %s617_s28 = sshll.u32 %s665_s27, 4  ;;  %s618_s28 = int_to_ptr.vmem [resolvable:$true] %s617_s28 }
  0x47   :  { %443 = vmatpush.msra.mxu2 %v208_v8  ;;  %462 = vmatpush.msra.mxu3 %v225_v9  ;;  %v27_v14 = vld [vmem:[%s1356_s0 + $0x30] sm:$0xff]  ;;  %v191_v16 = vld [vmem:[%s1357_s1 + $0x4e8] sm:$0xff]  ;;  %v25_v19 = vld [vmem:[%s1356_s0 + $0x20] sm:$0xff] }
  0x48   :  { %404 = vmatpush.msra.mxu0 %v175_v10  ;;  %423 = vmatpush.msra.mxu1 %v192_v11  ;;  %v223_v18 = vld [vmem:[%s1357_s1 + $0x5e8] sm:$0xff]  ;;  %v28_v20 = vld [vmem:[%s1356_s0 + $0x38] sm:$0xff]  ;;  %v190_v22 = vld [vmem:[%s1357_s1 + $0x4e0] sm:$0xff] }
  0x49   :  { %444 = vmatpush.msra.mxu2 %v207_v12  ;;  %463 = vmatpush.msra.mxu3 %v224_v13  ;;  %v173_v21 = vld [vmem:[%s1357_s1 + $0x458] sm:$0xff]  ;;  %v222_v24 = vld [vmem:[%s1357_s1 + $0x5e0] sm:$0xff]  ;;  %v26_v25 = vld [vmem:[%s1356_s0 + $0x28] sm:$0xff] }
  0x4a   :  { %378 = vmatmul.f32.vlgmr.msrb.gmra.mxu2 %v27_v14  ;;  %405 = vmatpush.msra.mxu0 %v174_v15  ;;  %v205_v23 = vld [vmem:[%s1357_s1 + $0x558] sm:$0xff]  ;;  %v172_v26 = vld [vmem:[%s1357_s1 + $0x450] sm:$0xff]  ;;  %v171_v30 = vld [vmem:[%s1357_s1 + $0x448] sm:$0xff] }
  0x4b   :  { %424 = vmatpush.msra.mxu1 %v191_v16  ;;  %445 = vmatpush.msra.mxu2 %v206_v17  ;;  %v189_v27 = vld [vmem:[%s1357_s1 + $0x4d8] sm:$0xff]  ;;  %v204_v28 = vld [vmem:[%s1357_s1 + $0x550] sm:$0xff]  ;;  %v203_v32 = vld [vmem:[%s1357_s1 + $0x548] sm:$0xff] }
  0x4c   :  { %464 = vmatpush.msra.mxu3 %v223_v18  ;;  %338 = vmatmul.f32.vlgmr.msrb.gmra.mxu0 %v25_v19  ;;  %v221_v29 = vld [vmem:[%s1357_s1 + $0x5d8] sm:$0xff]  ;;  %v188_v31 = vld [vmem:[%s1357_s1 + $0x4d0] sm:$0xff]  ;;  %v170_v34 = vld [vmem:[%s1357_s1 + $0x440] sm:$0xff] }
  0x4d   :  { %398 = vmatmul.f32.vlgmr.msrb.gmra.mxu3 %v28_v20  ;;  %406 = vmatpush.msra.mxu0 %v173_v21  ;;  %v220_v33 = vld [vmem:[%s1357_s1 + $0x5d0] sm:$0xff]  ;;  %v187_v35 = vld [vmem:[%s1357_s1 + $0x4c8] sm:$0xff]  ;;  %v202_v36 = vld [vmem:[%s1357_s1 + $0x540] sm:$0xff] }
  0x4e   :  { %425 = vmatpush.msra.mxu1 %v190_v22  ;;  %446 = vmatpush.msra.mxu2 %v205_v23  ;;  %v219_v37 = vld [vmem:[%s1357_s1 + $0x5c8] sm:$0xff]  ;;  %v169_v38 = vld [vmem:[%s1357_s1 + $0x438] sm:$0xff]  ;;  %v186_v39 = vld [vmem:[%s1357_s1 + $0x4c0] sm:$0xff] }
  0x4f   :  { %465 = vmatpush.msra.mxu3 %v222_v24  ;;  %358 = vmatmul.f32.vlgmr.msrb.gmra.mxu1 %v26_v25  ;;  %v201_v40 = vld [vmem:[%s1357_s1 + $0x538] sm:$0xff]  ;;  %v218_v41 = vld [vmem:[%s1357_s1 + $0x5c0] sm:$0xff]  ;;  %v168_v42 = vld [vmem:[%s1357_s1 + $0x430] sm:$0xff] }
  0x50   :  { %407 = vmatpush.msra.mxu0 %v172_v26  ;;  %426 = vmatpush.msra.mxu1 %v189_v27  ;;  %v185_v43 = vld [vmem:[%s1357_s1 + $0x4b8] sm:$0xff]  ;;  %v200_v44 = vld [vmem:[%s1357_s1 + $0x530] sm:$0xff]  ;;  %v167_v46 = vld [vmem:[%s1357_s1 + $0x428] sm:$0xff] }
  0x51   :  { %447 = vmatpush.msra.mxu2 %v204_v28  ;;  %466 = vmatpush.msra.mxu3 %v221_v29  ;;  %v217_v45 = vld [vmem:[%s1357_s1 + $0x5b8] sm:$0xff]  ;;  %v184_v47 = vld [vmem:[%s1357_s1 + $0x4b0] sm:$0xff]  ;;  %v199_v48 = vld [vmem:[%s1357_s1 + $0x528] sm:$0xff] }
  0x52   :  { %408 = vmatpush.msra.mxu0 %v171_v30  ;;  %427 = vmatpush.msra.mxu1 %v188_v31  ;;  %v216_v49 = vld [vmem:[%s1357_s1 + $0x5b0] sm:$0xff]  ;;  %v166_v50 = vld [vmem:[%s1357_s1 + $0x420] sm:$0xff]  ;;  %v183_v51 = vld [vmem:[%s1357_s1 + $0x4a8] sm:$0xff] }
  0x53   :  { %448 = vmatpush.msra.mxu2 %v203_v32  ;;  %467 = vmatpush.msra.mxu3 %v220_v33  ;;  %v198_v52 = vld [vmem:[%s1357_s1 + $0x520] sm:$0xff]  ;;  %v215_v53 = vld [vmem:[%s1357_s1 + $0x5a8] sm:$0xff]  ;;  %v165_v54 = vld [vmem:[%s1357_s1 + $0x418] sm:$0xff] }
  0x54   :  { %409 = vmatpush.msra.mxu0 %v170_v34  ;;  %428 = vmatpush.msra.mxu1 %v187_v35  ;;  %v182_v55 = vld [vmem:[%s1357_s1 + $0x4a0] sm:$0xff]  ;;  %v197_v56 = vld [vmem:[%s1357_s1 + $0x518] sm:$0xff]  ;;  %v164_v58 = vld [vmem:[%s1357_s1 + $0x410] sm:$0xff] }
  0x55   :  { %449 = vmatpush.msra.mxu2 %v202_v36  ;;  %468 = vmatpush.msra.mxu3 %v219_v37  ;;  %v214_v57 = vld [vmem:[%s1357_s1 + $0x5a0] sm:$0xff]  ;;  %v181_v59 = vld [vmem:[%s1357_s1 + $0x498] sm:$0xff]  ;;  %v196_v60 = vld [vmem:[%s1357_s1 + $0x510] sm:$0xff] }
  0x56   :  { %410 = vmatpush.msra.mxu0 %v169_v38  ;;  %429 = vmatpush.msra.mxu1 %v186_v39  ;;  %v213_v61 = vld [vmem:[%s1357_s1 + $0x598] sm:$0xff]  ;;  %v163_v62 = vld [vmem:[%s1357_s1 + $0x408] sm:$0xff]  ;;  %v180_v63 = vld [vmem:[%s1357_s1 + $0x490] sm:$0xff] }
  0x57   :  { %450 = vmatpush.msra.mxu2 %v201_v40  ;;  %469 = vmatpush.msra.mxu3 %v218_v41  ;;  %v195_v0 = vld [vmem:[%s1357_s1 + $0x508] sm:$0xff]  ;;  %v212_v1 = vld [vmem:[%s1357_s1 + $0x590] sm:$0xff]  ;;  %v162_v2 = vld [vmem:[%s1357_s1 + $0x400] sm:$0xff] }
  0x58   :  { %411 = vmatpush.msra.mxu0 %v168_v42  ;;  %430 = vmatpush.msra.mxu1 %v185_v43  ;;  %v179_v3 = vld [vmem:[%s1357_s1 + $0x488] sm:$0xff]  ;;  %v194_v4 = vld [vmem:[%s1357_s1 + $0x500] sm:$0xff]  ;;  %v31_v7 = vld [vmem:[%s1356_s0 + $0x50] sm:$0xff] }
  0x59   :  { %451 = vmatpush.msra.mxu2 %v200_v44  ;;  %470 = vmatpush.msra.mxu3 %v217_v45  ;;  %v211_v5 = vld [vmem:[%s1357_s1 + $0x588] sm:$0xff]  ;;  %v29_v6 = vld [vmem:[%s1356_s0 + $0x40] sm:$0xff]  ;;  %v233_v8 = vld [vmem:[%s1357_s1 + $0x638] sm:$0xff] }
  0x5a   :  { %412 = vmatpush.msra.mxu0 %v167_v46  ;;  %431 = vmatpush.msra.mxu1 %v184_v47  ;;  %v178_v9 = vld [vmem:[%s1357_s1 + $0x480] sm:$0xff]  ;;  %v30_v11 = vld [vmem:[%s1356_s0 + $0x48] sm:$0xff]  ;;  %v32_v12 = vld [vmem:[%s1356_s0 + $0x58] sm:$0xff] }
  0x5b   :  { %452 = vmatpush.msra.mxu2 %v199_v48  ;;  %471 = vmatpush.msra.mxu3 %v216_v49  ;;  %v210_v10 = vld [vmem:[%s1357_s1 + $0x580] sm:$0xff]  ;;  %v232_v13 = vld [vmem:[%s1357_s1 + $0x630] sm:$0xff]  ;;  %v231_v14 = vld [vmem:[%s1357_s1 + $0x628] sm:$0xff] }
  0x5c   :  { %413 = vmatpush.msra.mxu0 %v166_v50  ;;  %432 = vmatpush.msra.mxu1 %v183_v51  ;;  %v230_v15 = vld [vmem:[%s1357_s1 + $0x620] sm:$0xff]  ;;  %v229_v16 = vld [vmem:[%s1357_s1 + $0x618] sm:$0xff]  ;;  %v228_v17 = vld [vmem:[%s1357_s1 + $0x610] sm:$0xff] }
  0x5d   :  { %453 = vmatpush.msra.mxu2 %v198_v52  ;;  %472 = vmatpush.msra.mxu3 %v215_v53  ;;  %v227_v18 = vld [vmem:[%s1357_s1 + $0x608] sm:$0xff]  ;;  %v226_v19 = vld [vmem:[%s1357_s1 + $0x600] sm:$0xff]  ;;  %v632_v33 = vld [vmem:[%s1359_s3 + $0x10] sm:$0xff] }
  0x5e   :  { %414 = vmatpush.msra.mxu0 %v165_v54  ;;  %433 = vmatpush.msra.mxu1 %v182_v55  ;;  %v33_v20 = vld [vmem:[%s1356_s0 + $0x60] sm:$0xff]  ;;  %v630_v25 = vld [vmem:[%s1359_s3 + $0x8] sm:$0xff]  ;;  %v634_v35 = vld [vmem:[%s1359_s3 + $0x18] sm:$0xff] }
  0x5f   :  { %454 = vmatpush.msra.mxu2 %v197_v56  ;;  %473 = vmatpush.msra.mxu3 %v214_v57  ;;  %v637_v21 = vld [vmem:[%s1358_s2] ss:$0 sm:$0xff] }
  0x60   :  { %415 = vmatpush.msra.mxu0 %v164_v58  ;;  %434 = vmatpush.msra.mxu1 %v181_v59  ;;  %v504_v31 = vld [vmem:[%s1359_s3] sm:$0xff] }
  0x61   :  { %455 = vmatpush.msra.mxu2 %v196_v60  ;;  %474 = vmatpush.msra.mxu3 %v213_v61  ;;  %v638_v57 = vld [vmem:[%s1360_s4] ss:$0 sm:$0xff] }
  0x62   :  { %416 = vmatpush.msra.mxu0 %v163_v62  ;;  %435 = vmatpush.msra.mxu1 %v180_v63 }
  0x63   :  { %456 = vmatpush.msra.mxu2 %v195_v0  ;;  %475 = vmatpush.msra.mxu3 %v212_v1 }
  0x64   :  { %417 = vmatpush.msra.mxu0 %v162_v2  ;;  %436 = vmatpush.msra.mxu1 %v179_v3 }
  0x65   :  { %457 = vmatpush.msra.mxu2 %v194_v4  ;;  %476 = vmatpush.msra.mxu3 %v211_v5 }
  0x66   :  { %418 = vmatmul.f32.vlgmr.msra.gmra.mxu0 %v29_v6  ;;  %458 = vmatmul.f32.vlgmr.msra.gmra.mxu2 %v31_v7 }
  0x67   :  { %490 = vmatpush.msrb.mxu0 %v233_v8  ;;  %437 = vmatpush.msra.mxu1 %v178_v9 }
  0x68   :  { %477 = vmatpush.msra.mxu3 %v210_v10  ;;  %438 = vmatmul.f32.vlgmr.msra.gmra.mxu1 %v30_v11 }
  0x69   :  { %478 = vmatmul.f32.vlgmr.msra.gmra.mxu3 %v32_v12  ;;  %491 = vmatpush.msrb.mxu0 %v232_v13 }
  0x6a   :  { %553 = vmatpush.msrb.mxu2 %v630_v25  ;;  %524 = vmatpush.msrb.mxu1 %v504_v31 }
  0x6b   :  { %492 = vmatpush.msrb.mxu0 %v231_v14  ;;  %579 = vmatpush.msrb.mxu3 %v632_v33 }
  0x6c   :  { %605 = vmatpush.msra.mxu1 %v634_v35 }
  0x6d   :  { %493 = vmatpush.msrb.mxu0 %v230_v15 }
  0x6f   :  { %494 = vmatpush.msrb.mxu0 %v229_v16 }
  0x71   :  { %495 = vmatpush.msrb.mxu0 %v228_v17 }
  0x73   :  { %496 = vmatpush.msrb.mxu0 %v227_v18 }
  0x75   :  { %497 = vmatpush.msrb.mxu0 %v226_v19 }
  0x76   :  { %628 = vmatmul.msk.f32.vlgmr.msrb.gmra.mxu0 %vm238_vm0, %v33_v20 }
  0xbf   :  { %v259_v22 = vpop.f32.mrf.mxu0 }
  0xc0   :  { %v260_v23 = vadd.f32 %v637_v21, %v259_v22 }
  0xc2   :  { %v279_v24 = vpop.f32.mrf.mxu1 }
  0xc3   :  { %v280_v26 = vadd.f32 %v279_v24, %v260_v23  ;;  %v299_v27 = vpop.f32.mrf.mxu2 }
  0xc5   :  { %v300_v28 = vadd.f32 %v299_v27, %v280_v26 }
  0xc6   :  { %v319_v29 = vpop.f32.mrf.mxu3 }
  0xc7   :  { %v320_v30 = vadd.f32 %v319_v29, %v300_v28 }
  0xc9   :  { %v339_v32 = vpop.f32.mrf.mxu0 }
  0xca   :  { %v340_v34 = vadd.f32 %v339_v32, %v320_v30 }
  0xcc   :  { %v359_v36 = vpop.f32.mrf.mxu1 }
  0xcd   :  { %v360_v37 = vadd.f32 %v359_v36, %v340_v34  ;;  %v379_v38 = vpop.f32.mrf.mxu2 }
  0xcf   :  { %v380_v39 = vadd.f32 %v379_v38, %v360_v37 }
  0xd0   :  { %v399_v40 = vpop.f32.mrf.mxu3 }
  0xd1   :  { %v400_v42 = vadd.f32 %v399_v40, %v380_v39 }
  0xe3   :  { %v419_v41 = vpop.f32.mrf.mxu0 }
  0xe4   :  { %v420_v43 = vadd.f32 %v419_v41, %v400_v42 }
  0xe5   :  { %v439_v44 = vpop.f32.mrf.mxu1 }
  0xe6   :  { %v440_v46 = vadd.f32 %v439_v44, %v420_v43 }
  0xe9   :  { %v459_v45 = vpop.f32.mrf.mxu2 }
  0xea   :  { %v460_v47 = vadd.f32 %v459_v45, %v440_v46 }
  0xec   :  { %v479_v48 = vpop.f32.mrf.mxu3 }
  0xed   :  { %v480_v49 = vadd.f32 %v479_v48, %v460_v47 }
  0xf3   :  { %v499_v50 = vpop.f32.mrf.mxu0 }
  0xf4   :  { %v500_v51 = vadd.f32 %v499_v50, %v480_v49 }
  0xf6   :  { %v502_v52 = vmax.f32 %v500_v51, 0.0 }
  0xf8   :  { %v535_v53 = vrot.slane %v502_v52, 2  ;;  %v561_v54 = vrot.slane %v502_v52, 4  ;;  %629 = vmatmul.msk.f32.vlgmr.msrb.gmra.mxu1 %vm505_vm1, %v502_v52  ;;  %v587_v55 = vrot.slane %v502_v52, 6 }
  0xfa   :  { %631 = vmatmul.msk.f32.vlgmr.msrb.gmra.mxu2 %vm505_vm1, %v535_v53  ;;  %633 = vmatmul.msk.f32.vlgmr.msrb.gmra.mxu3 %vm505_vm1, %v561_v54 }
 0x100   :  { %635 = vmatmul.msk.f32.vlgmr.msra.gmra.mxu1 %vm505_vm1, %v587_v55 }
 0x175   :  { %v526_v56 = vpop.f32.mrf.mxu1 }
 0x176   :  { %v532_v58 = vadd.f32 %v638_v57, %v526_v56 }
 0x17d   :  { %v555_v59 = vpop.f32.mrf.mxu2  ;;  %v581_v61 = vpop.f32.mrf.mxu3 }
 0x17e   :  { %v558_v60 = vadd.f32 %v555_v59, %v532_v58  ;;  %v607_v63 = vpop.f32.mrf.mxu1 }
 0x180   :  { %v584_v62 = vadd.f32 %v581_v61, %v558_v60 }
 0x182   :  { %v610_v0 = vadd.f32 %v607_v63, %v584_v62 }
 0x184   :  { %611 = vst [vmem:[#allocation2] sm:$0x3] %v610_v0 }
 0x185   :  { %622 = dma.vmem_to_hbm [thread:$0]  %s618_s28, 32, %s620_s6, [#allocation3]  }
 0x186   :  { %663 = dma.done.wait [#allocation3], 32  }
 0x187   :  { %664 = vsyncadd [#allocation3], 4294967264 }
 0x188   :  { %627 = vsyncpa [#allocation3], 1 }

</bundles_post_ra>
